<compile_context>
chip_gen: v7x
topology: tpu7x:2x2x1
jax: 0.10.0
libtpu: 0.0.40
codegen_flags: <defaults>
</compile_context>

<pallas_src>
import numpy as np
import jax
import jax.numpy as jnp
from jax import lax
from jax.experimental import pallas as pl
from jax.experimental.pallas import tpu as pltpu

_BN_EPS = 1e-5
_MXU_DTYPE = jnp.bfloat16      # matmul operand dtype (accumulation stays f32)
_TB = 8                        # batch tile: multiple of 8 sublanes; head matmuls see M>=8
_H0 = 16                       # geometry implied by fc_shared: 32*(16/8)*(16/8) = 128
_W0 = 16


# ------------------------------ Pallas kernel -------------------------------

def _pad_h(a):
    """(H, TB, W*C) -> (H+2, TB, W*C): zero rows on the h (leading) axis."""
    z = jnp.zeros((1,) + a.shape[1:], a.dtype)
    return jnp.concatenate([z, a, z], axis=0)


def _conv_block(xp, w_ref, b_ref, H, W, Cin, Cout):
    """conv3x3(pad=1) + bias + ReLU + 2x2 maxpool, entirely in VMEM/vregs.

    xp    : (H+2, TB, W*Cin) f32, h-padded activation; lane layout = (w, cin).
    w_ref : (3, W*Cin, W*Cout) bf16 banded weights (one matrix per kernel row dy);
            output columns = [even-w block | odd-w block], each (W//2)*Cout wide,
            so the matmul output is a full 128-lane tile for every layer.
    b_ref : (1, W*Cout) f32 lane-aligned bias.
    returns (H//2, TB, (W//2)*Cout) f32 pooled activation (same lane layout).
    """
    tb = xp.shape[1]
    half = (W // 2) * Cout
    acc = None
    for dy in range(3):                                        # 3 lane-dense MXU matmuls
        a = xp[dy:dy + H].reshape(H * tb, W * Cin).astype(_MXU_DTYPE)
        t = jnp.dot(a, w_ref[dy], preferred_element_type=jnp.float32)
        acc = t if acc is None else acc + t
    y = jnp.maximum(acc + b_ref[...], 0.0)                     # bias + ReLU (f32, VPU)
    y = jnp.maximum(y[:, :half], y[:, half:])                  # maxpool over w (even/odd halves)
    y = y.reshape(H // 2, 2, tb, half)
    return jnp.maximum(y[:, 0], y[:, 1])                       # maxpool over h (adjacent rows)


def _fused_forward_kernel(x_ref,
                          cw1, cb1, cw2, cb2, cw3, cb3,
                          wfc, bfc, wp1, bp1, wp2, bp2, wp3, bp3,
                          o_ref):
    f32 = jnp.float32
    # encoder. TODO(synk): encoder.dropout is identity in eval/inference mode (no-op).
    a = _conv_block(x_ref[...].astype(f32), cw1, cb1, 16, 16, 1, 8)    # (8, TB, 64)
    a = _conv_block(_pad_h(a), cw2, cb2, 8, 8, 8, 16)                  # (4, TB, 64)
    a = _conv_block(_pad_h(a), cw3, cb3, 4, 4, 16, 32)                 # (2, TB, 64)

    # flatten (NCHW order pre-folded into wfc) + fc_shared + ReLU
    h = (jnp.dot(a[0].astype(_MXU_DTYPE), wfc[0], preferred_element_type=f32)
         + jnp.dot(a[1].astype(_MXU_DTYPE), wfc[1], preferred_element_type=f32)
         + bfc[...])
    h = jnp.maximum(h, 0.0)                                            # (TB, 64)

    # SimCLR projection head; eval-mode BatchNorms folded into wp1/bp1 and wp2/bp2.
    z = jnp.maximum(jnp.dot(h.astype(_MXU_DTYPE), wp1[...],
                            preferred_element_type=f32) + bp1[...], 0.0)   # (TB, 512)
    z = jnp.maximum(jnp.dot(z.astype(_MXU_DTYPE), wp2[...],
                            preferred_element_type=f32) + bp2[...], 0.0)   # (TB, 256)
    o_ref[...] = jnp.dot(z.astype(_MXU_DTYPE), wp3[...],
                         preferred_element_type=f32) + bp3[...]            # (TB, 128)


# ------------------------- parameter prep (one-time) -------------------------

def _banded_conv_matrix(wt, W):
    """HWIO 3x3 weight -> (3, W*Cin, W*Cout) banded matrices over the w dimension.

    Row index    : w_in * Cin + ci                         (unpadded input column)
    Column index : parity*(W//2)*Cout + wo*Cout + c        (output column w = 2*wo+parity)
    Out-of-range taps (SAME zero padding in w) are simply dropped.
    """
    Cin, Cout = wt.shape[2], wt.shape[3]
    half = (W // 2) * Cout
    B = np.zeros((3, W * Cin, 2 * half), np.float32)
    for dy in range(3):
        for parity in range(2):
            for wo in range(W // 2):
                w_out = 2 * wo + parity
                c0 = parity * half + wo * Cout
                for dx in range(3):
                    w_in = w_out + dx - 1
                    if 0 <= w_in < W:
                        B[dy, w_in * Cin:(w_in + 1) * Cin, c0:c0 + Cout] = wt[dy, dx]
    return B


def prep_params(p, dtype=_MXU_DTYPE):
    """Fold BN into Linears, build banded conv matrices, fold the NCHW flatten into fc."""
    kp = {}
    for li, ((w, b), W) in enumerate(zip(p["convs"], (_W0, _W0 // 2, _W0 // 4)), 1):
        kp[f"cw{li}"] = jnp.asarray(_banded_conv_matrix(np.asarray(w, np.float32), W), dtype)
        kp[f"cb{li}"] = jnp.tile(jnp.asarray(b, jnp.float32).reshape(1, -1), (1, W))

    # fc_shared rows are in torch NCHW-flatten order (c*4 + h*2 + w); reorder them to the
    # kernel's per-h-plane (w*C + c) lane layout so no in-kernel transpose is needed.
    wfc = np.asarray(p["wfc"], np.float32).reshape(32, 2, 2, -1)        # (c, h, w, out)
    kp["wfc"] = jnp.asarray(wfc.transpose(1, 2, 0, 3).reshape(2, 64, -1), dtype)
    kp["bfc"] = jnp.asarray(p["bfc"], jnp.float32)

    def fold_bn(w, b, g, be, m, v):
        s = np.asarray(g, np.float32) / np.sqrt(np.asarray(v, np.float32) + _BN_EPS)
        wf = np.asarray(w, np.float32) * s
        bf = (np.asarray(b, np.float32) - np.asarray(m, np.float32)) * s + np.asarray(be, np.float32)
        return jnp.asarray(wf, dtype), jnp.asarray(bf, jnp.float32)

    kp["wp1"], kp["bp1"] = fold_bn(p["w1"], p["b1"], p["g1"], p["be1"], p["m1"], p["v1"])
    kp["wp2"], kp["bp2"] = fold_bn(p["w2"], p["b2"], p["g2"], p["be2"], p["m2"], p["v2"])
    kp["wp3"] = jnp.asarray(p["w3"], dtype)
    kp["bp3"] = jnp.asarray(p["b3"], jnp.float32)
    return kp


# ------------------------------ forward wrapper ------------------------------

def _const_index_map(ndim):
    def imap(i):
        return (0,) * ndim
    return imap


def forward(x, kp, batch_tile=_TB):
    """x: (N, 16, 16) spectrogram batch (or (N, 1, 16, 16) NCHW)."""
    if x.ndim == 4:                       # torch path: x.unsqueeze(1) -> NCHW with C=1
        x = x[:, 0]
    N, H, W = x.shape
    assert (H, W) == (_H0, _W0) and batch_tile % 8 == 0
    npad = -(-N // batch_tile) * batch_tile

    # Boundary layout glue only: (N,H,W) -> (H+2, Npad, W) with one zero h-pad row per
    # side, so the batch tile sits on sublanes and width(*channels) sits on lanes.
    xb = jnp.zeros((H + 2, npad, W), jnp.float32)
    xb = xb.at[1:H + 1, :N, :].set(jnp.transpose(x.astype(jnp.float32), (1, 0, 2)))

    weights = (kp["cw1"], kp["cb1"], kp["cw2"], kp["cb2"], kp["cw3"], kp["cb3"],
               kp["wfc"], kp["bfc"], kp["wp1"], kp["bp1"], kp["wp2"], kp["bp2"],
               kp["wp3"], kp["bp3"])
    out_dim = kp["wp3"].shape[1]

    in_specs = [pl.BlockSpec((H + 2, batch_tile, W), lambda i: (0, i, 0))]
    # Weights: full-array blocks with grid-invariant indices -> DMA'd to VMEM once and
    # kept resident across all batch tiles (~0.6 MiB total in bf16).
    in_specs += [pl.BlockSpec(a.shape, _const_index_map(a.ndim)) for a in weights]

    out = pl.pallas_call(
        _fused_forward_kernel,
        out_shape=jax.ShapeDtypeStruct((npad, out_dim), jnp.float32),
        grid=(npad // batch_tile,),
        in_specs=in_specs,
        out_specs=pl.BlockSpec((batch_tile, out_dim), lambda i: (i, 0)),
        compiler_params=pltpu.CompilerParams(
            dimension_semantics=("parallel",),     # batch tiles independent (v7x: 2 TCs)
            vmem_limit_bytes=32 * 1024 * 1024,     # explicit; well under v7x's 64 MiB VMEM
        ),
    )(xb, *weights)
    return out[:N]


# ----------------------------- reference (JAX) -------------------------------

def reference(x, p):
    """Pure-JAX f32 reference (unfused, unfolded BN)."""
    if x.ndim == 4:
        x = x[:, 0]
    a = x[..., None].astype(jnp.float32)
    for (w, b) in p["convs"]:
        a = lax.conv_general_dilated(
            a, w, (1, 1), "SAME",
            dimension_numbers=("NHWC", "HWIO", "NHWC"),
            preferred_element_type=jnp.float32)
        a = jnp.maximum(a + b.reshape(1, 1, 1, -1), 0.0)
        N, H, W, C = a.shape
        a = a.reshape(N, H // 2, 2, W // 2, 2, C).max(axis=(2, 4))
    flat = a.transpose(0, 3, 1, 2).reshape(a.shape[0], -1)

    def bn(z, g, be, m, v):
        return g * (z - m) * lax.rsqrt(v + _BN_EPS) + be

    h = jnp.maximum(flat @ p["wfc"] + p["bfc"], 0.0)
    z = jnp.maximum(bn(h @ p["w1"] + p["b1"], p["g1"], p["be1"], p["m1"], p["v1"]), 0.0)
    z = jnp.maximum(bn(z @ p["w2"] + p["b2"], p["g2"], p["be2"], p["m2"], p["v2"]), 0.0)
    return z @ p["w3"] + p["b3"]


# ------------------------------ param init -----------------------------------

def init_params(key):
    ks = iter(jax.random.split(key, 24))

    def conv_wb(cin, cout):
        w = jax.random.normal(next(ks), (3, 3, cin, cout), jnp.float32) / jnp.sqrt(9.0 * cin)
        b = 0.1 * jax.random.normal(next(ks), (1, cout), jnp.float32)
        return w, b

    def lin_wb(fi, fo):
        w = jax.random.normal(next(ks), (fi, fo), jnp.float32) / jnp.sqrt(float(fi))
        b = 0.1 * jax.random.normal(next(ks), (1, fo), jnp.float32)
        return w, b

    def bn(dim):
        g = 1.0 + 0.1 * jax.random.normal(next(ks), (1, dim), jnp.float32)
        be = 0.1 * jax.random.normal(next(ks), (1, dim), jnp.float32)
        m = 0.1 * jax.random.normal(next(ks), (1, dim), jnp.float32)
        v = jax.random.uniform(next(ks), (1, dim), jnp.float32, minval=0.5, maxval=1.5)
        return g, be, m, v

    c1 = conv_wb(1, 8)
    c2 = conv_wb(8, 16)
    c3 = conv_wb(16, 32)
    wfc, bfc = lin_wb(32 * 2 * 2, 64)                  # encoder.fc_shared: 128 -> 64
    w1, b1 = lin_wb(64, 512)                           # projection head (hidden_dim=512)
    g1, be1, m1, v1 = bn(512)
    w2, b2 = lin_wb(512, 256)
    g2, be2, m2, v2 = bn(256)
    w3, b3 = lin_wb(256, 128)                          # out_dim = projection_dim = 128
    return dict(convs=[c1, c2, c3], wfc=wfc, bfc=bfc,
                w1=w1, b1=b1, g1=g1, be1=be1, m1=m1, v1=v1,
                w2=w2, b2=b2, g2=g2, be2=be2, m2=m2, v2=v2,
                w3=w3, b3=b3)


# --------------------------------- main --------------------------------------

if __name__ == "__main__":
    key = jax.random.PRNGKey(0)
    pkey, xkey, x2key = jax.random.split(key, 3)
    params = init_params(pkey)
    kparams = prep_params(params)            # BN folding / banded conv weights (one-time)

    fwd = jax.jit(forward)

    # torch path: 3-dim (N, 16, 16) input, unsqueeze(1) -> (N, 1, 16, 16) NCHW.
    x = jax.random.normal(xkey, (2, 16, 16), jnp.float32)
    out = jax.block_until_ready(fwd(x, kparams))
    assert out.shape == (2, 128), out.shape

    ref = reference(x, params)
    # bf16 matmul operands (f32 accumulate) vs a full-f32 reference -> quantization-level tol.
    if not bool(jnp.allclose(out, ref, rtol=5e-2, atol=5e-2)):
        err = float(jnp.max(jnp.abs(out - ref)))
        raise AssertionError(f"Pallas output does not match JAX reference (max |err|={err:.4f})")

    # Also exercise a multi-tile 'parallel' batch grid (4 batch tiles of 8).
    x2 = jax.random.normal(x2key, (32, 16, 16), jnp.float32)
    out2 = jax.block_until_ready(fwd(x2, kparams))
    if not bool(jnp.allclose(out2, reference(x2, params), rtol=5e-2, atol=5e-2)):
        raise AssertionError("Pallas output does not match JAX reference (batch=32)")

    print("KERNEL_OK")
</pallas_src>

<mosaic_0001>
module attributes {stable_mosaic.version = 11 : i64} {
  func.func @_fused_forward_kernel(%arg0: i32, %arg1: memref<18x8x16xf32, #tpu.memory_space<vmem>>, %arg2: memref<3x16x128xbf16, #tpu.memory_space<vmem>>, %arg3: memref<1x128xf32, #tpu.memory_space<vmem>>, %arg4: memref<3x64x128xbf16, #tpu.memory_space<vmem>>, %arg5: memref<1x128xf32, #tpu.memory_space<vmem>>, %arg6: memref<3x64x128xbf16, #tpu.memory_space<vmem>>, %arg7: memref<1x128xf32, #tpu.memory_space<vmem>>, %arg8: memref<2x64x64xbf16, #tpu.memory_space<vmem>>, %arg9: memref<1x64xf32, #tpu.memory_space<vmem>>, %arg10: memref<64x512xbf16, #tpu.memory_space<vmem>>, %arg11: memref<1x512xf32, #tpu.memory_space<vmem>>, %arg12: memref<512x256xbf16, #tpu.memory_space<vmem>>, %arg13: memref<1x256xf32, #tpu.memory_space<vmem>>, %arg14: memref<256x128xbf16, #tpu.memory_space<vmem>>, %arg15: memref<1x128xf32, #tpu.memory_space<vmem>>, %arg16: memref<8x128xf32, #tpu.memory_space<vmem>>) attributes {dimension_semantics = [#tpu.dimension_semantics<parallel>], iteration_bounds = array<i64: 1>, scalar_prefetch = 0 : i64, scratch_operands = 0 : i64, tpu.core_type = #tpu.core_type<tc>, window_params = [{transform_indices = @transform_0, window_bounds = array<i64: 18, 8, 16>}, {pipeline_mode = #tpu.pipeline_mode<synchronous>, transform_indices = @transform_1, window_bounds = array<i64: 3, 16, 128>}, {pipeline_mode = #tpu.pipeline_mode<synchronous>, transform_indices = @transform_2, window_bounds = array<i64: 1, 128>}, {pipeline_mode = #tpu.pipeline_mode<synchronous>, transform_indices = @transform_3, window_bounds = array<i64: 3, 64, 128>}, {pipeline_mode = #tpu.pipeline_mode<synchronous>, transform_indices = @transform_4, window_bounds = array<i64: 1, 128>}, {pipeline_mode = #tpu.pipeline_mode<synchronous>, transform_indices = @transform_5, window_bounds = array<i64: 3, 64, 128>}, {pipeline_mode = #tpu.pipeline_mode<synchronous>, transform_indices = @transform_6, window_bounds = array<i64: 1, 128>}, {pipeline_mode = #tpu.pipeline_mode<synchronous>, transform_indices = @transform_7, window_bounds = array<i64: 2, 64, 64>}, {pipeline_mode = #tpu.pipeline_mode<synchronous>, transform_indices = @transform_8, window_bounds = array<i64: 1, 64>}, {pipeline_mode = #tpu.pipeline_mode<synchronous>, transform_indices = @transform_9, window_bounds = array<i64: 64, 512>}, {pipeline_mode = #tpu.pipeline_mode<synchronous>, transform_indices = @transform_10, window_bounds = array<i64: 1, 512>}, {pipeline_mode = #tpu.pipeline_mode<synchronous>, transform_indices = @transform_11, window_bounds = array<i64: 512, 256>}, {pipeline_mode = #tpu.pipeline_mode<synchronous>, transform_indices = @transform_12, window_bounds = array<i64: 1, 256>}, {pipeline_mode = #tpu.pipeline_mode<synchronous>, transform_indices = @transform_13, window_bounds = array<i64: 256, 128>}, {pipeline_mode = #tpu.pipeline_mode<synchronous>, transform_indices = @transform_14, window_bounds = array<i64: 1, 128>}, {transform_indices = @transform_15, window_bounds = array<i64: 8, 128>}]} {
    %c0 = arith.constant 0 : index
    %c0_0 = arith.constant 0 : index
    %c0_1 = arith.constant 0 : index
    %0 = vector.load %arg1[%c0, %c0_0, %c0_1] : memref<18x8x16xf32, #tpu.memory_space<vmem>>, vector<18x8x16xf32>
    %1 = vector.extract_strided_slice %0 {offsets = [0, 0, 0], sizes = [16, 8, 16], strides = [1, 1, 1]} : vector<18x8x16xf32> to vector<16x8x16xf32>
    %2 = vector.shape_cast %1 : vector<16x8x16xf32> to vector<128x16xf32>
    %3 = arith.truncf %2 : vector<128x16xf32> to vector<128x16xbf16>
    %c0_2 = arith.constant 0 : index
    %c0_3 = arith.constant 0 : index
    %c0_4 = arith.constant 0 : index
    %4 = vector.load %arg2[%c0_2, %c0_3, %c0_4] : memref<3x16x128xbf16, #tpu.memory_space<vmem>>, vector<1x16x128xbf16>
    %5 = vector.shape_cast %4 : vector<1x16x128xbf16> to vector<16x128xbf16>
    %cst = arith.constant dense<0.000000e+00> : vector<128x128xf32>
    %6 = tpu.matmul %3, %5, %cst {dimension_numbers = #tpu.dot_dimension_numbers<[1], [0], [0], [1], [0, 0, 1, 1], [], []>} : vector<128x16xbf16>, vector<16x128xbf16>, vector<128x128xf32> -> vector<128x128xf32>
    %7 = vector.extract_strided_slice %0 {offsets = [1, 0, 0], sizes = [16, 8, 16], strides = [1, 1, 1]} : vector<18x8x16xf32> to vector<16x8x16xf32>
    %8 = vector.shape_cast %7 : vector<16x8x16xf32> to vector<128x16xf32>
    %9 = arith.truncf %8 : vector<128x16xf32> to vector<128x16xbf16>
    %c1 = arith.constant 1 : index
    %c0_5 = arith.constant 0 : index
    %c0_6 = arith.constant 0 : index
    %10 = vector.load %arg2[%c1, %c0_5, %c0_6] : memref<3x16x128xbf16, #tpu.memory_space<vmem>>, vector<1x16x128xbf16>
    %11 = vector.shape_cast %10 : vector<1x16x128xbf16> to vector<16x128xbf16>
    %cst_7 = arith.constant dense<0.000000e+00> : vector<128x128xf32>
    %12 = tpu.matmul %9, %11, %cst_7 {dimension_numbers = #tpu.dot_dimension_numbers<[1], [0], [0], [1], [0, 0, 1, 1], [], []>} : vector<128x16xbf16>, vector<16x128xbf16>, vector<128x128xf32> -> vector<128x128xf32>
    %13 = arith.addf %6, %12 : vector<128x128xf32>
    %14 = vector.extract_strided_slice %0 {offsets = [2, 0, 0], sizes = [16, 8, 16], strides = [1, 1, 1]} : vector<18x8x16xf32> to vector<16x8x16xf32>
    %15 = vector.shape_cast %14 : vector<16x8x16xf32> to vector<128x16xf32>
    %16 = arith.truncf %15 : vector<128x16xf32> to vector<128x16xbf16>
    %c2 = arith.constant 2 : index
    %c0_8 = arith.constant 0 : index
    %c0_9 = arith.constant 0 : index
    %17 = vector.load %arg2[%c2, %c0_8, %c0_9] : memref<3x16x128xbf16, #tpu.memory_space<vmem>>, vector<1x16x128xbf16>
    %18 = vector.shape_cast %17 : vector<1x16x128xbf16> to vector<16x128xbf16>
    %cst_10 = arith.constant dense<0.000000e+00> : vector<128x128xf32>
    %19 = tpu.matmul %16, %18, %cst_10 {dimension_numbers = #tpu.dot_dimension_numbers<[1], [0], [0], [1], [0, 0, 1, 1], [], []>} : vector<128x16xbf16>, vector<16x128xbf16>, vector<128x128xf32> -> vector<128x128xf32>
    %20 = arith.addf %13, %19 : vector<128x128xf32>
    %c0_11 = arith.constant 0 : index
    %c0_12 = arith.constant 0 : index
    %21 = vector.load %arg3[%c0_11, %c0_12] : memref<1x128xf32, #tpu.memory_space<vmem>>, vector<1x128xf32>
    %22 = vector.broadcast %21 : vector<1x128xf32> to vector<128x128xf32>
    %23 = arith.addf %20, %22 : vector<128x128xf32>
    %cst_13 = arith.constant 0.000000e+00 : f32
    %24 = vector.broadcast %cst_13 : f32 to vector<128x128xf32>
    %25 = arith.maximumf %23, %24 : vector<128x128xf32>
    %26 = vector.extract_strided_slice %25 {offsets = [0, 0], sizes = [128, 64], strides = [1, 1]} : vector<128x128xf32> to vector<128x64xf32>
    %27 = vector.extract_strided_slice %25 {offsets = [0, 64], sizes = [128, 64], strides = [1, 1]} : vector<128x128xf32> to vector<128x64xf32>
    %28 = arith.maximumf %26, %27 : vector<128x64xf32>
    %29 = vector.shape_cast %28 : vector<128x64xf32> to vector<8x2x8x64xf32>
    %30 = vector.extract_strided_slice %29 {offsets = [0, 0, 0, 0], sizes = [8, 1, 8, 64], strides = [1, 1, 1, 1]} : vector<8x2x8x64xf32> to vector<8x1x8x64xf32>
    %31 = vector.shape_cast %30 : vector<8x1x8x64xf32> to vector<8x8x64xf32>
    %32 = vector.extract_strided_slice %29 {offsets = [0, 1, 0, 0], sizes = [8, 1, 8, 64], strides = [1, 1, 1, 1]} : vector<8x2x8x64xf32> to vector<8x1x8x64xf32>
    %33 = vector.shape_cast %32 : vector<8x1x8x64xf32> to vector<8x8x64xf32>
    %34 = arith.maximumf %31, %33 : vector<8x8x64xf32>
    %cst_14 = arith.constant 0.000000e+00 : f32
    %35 = vector.broadcast %cst_14 : f32 to vector<1x8x64xf32>
    %36 = tpu.concatenate %35, %34, %35 in 0 : vector<1x8x64xf32>, vector<8x8x64xf32>, vector<1x8x64xf32> -> vector<10x8x64xf32>
    %37 = vector.extract_strided_slice %36 {offsets = [0, 0, 0], sizes = [8, 8, 64], strides = [1, 1, 1]} : vector<10x8x64xf32> to vector<8x8x64xf32>
    %38 = vector.shape_cast %37 : vector<8x8x64xf32> to vector<64x64xf32>
    %39 = arith.truncf %38 : vector<64x64xf32> to vector<64x64xbf16>
    %c0_15 = arith.constant 0 : index
    %c0_16 = arith.constant 0 : index
    %c0_17 = arith.constant 0 : index
    %40 = vector.load %arg4[%c0_15, %c0_16, %c0_17] : memref<3x64x128xbf16, #tpu.memory_space<vmem>>, vector<1x64x128xbf16>
    %41 = vector.shape_cast %40 : vector<1x64x128xbf16> to vector<64x128xbf16>
    %cst_18 = arith.constant dense<0.000000e+00> : vector<64x128xf32>
    %42 = tpu.matmul %39, %41, %cst_18 {dimension_numbers = #tpu.dot_dimension_numbers<[1], [0], [0], [1], [0, 0, 1, 1], [], []>} : vector<64x64xbf16>, vector<64x128xbf16>, vector<64x128xf32> -> vector<64x128xf32>
    %43 = vector.extract_strided_slice %36 {offsets = [1, 0, 0], sizes = [8, 8, 64], strides = [1, 1, 1]} : vector<10x8x64xf32> to vector<8x8x64xf32>
    %44 = vector.shape_cast %43 : vector<8x8x64xf32> to vector<64x64xf32>
    %45 = arith.truncf %44 : vector<64x64xf32> to vector<64x64xbf16>
    %c1_19 = arith.constant 1 : index
    %c0_20 = arith.constant 0 : index
    %c0_21 = arith.constant 0 : index
    %46 = vector.load %arg4[%c1_19, %c0_20, %c0_21] : memref<3x64x128xbf16, #tpu.memory_space<vmem>>, vector<1x64x128xbf16>
    %47 = vector.shape_cast %46 : vector<1x64x128xbf16> to vector<64x128xbf16>
    %cst_22 = arith.constant dense<0.000000e+00> : vector<64x128xf32>
    %48 = tpu.matmul %45, %47, %cst_22 {dimension_numbers = #tpu.dot_dimension_numbers<[1], [0], [0], [1], [0, 0, 1, 1], [], []>} : vector<64x64xbf16>, vector<64x128xbf16>, vector<64x128xf32> -> vector<64x128xf32>
    %49 = arith.addf %42, %48 : vector<64x128xf32>
    %50 = vector.extract_strided_slice %36 {offsets = [2, 0, 0], sizes = [8, 8, 64], strides = [1, 1, 1]} : vector<10x8x64xf32> to vector<8x8x64xf32>
    %51 = vector.shape_cast %50 : vector<8x8x64xf32> to vector<64x64xf32>
    %52 = arith.truncf %51 : vector<64x64xf32> to vector<64x64xbf16>
    %c2_23 = arith.constant 2 : index
    %c0_24 = arith.constant 0 : index
    %c0_25 = arith.constant 0 : index
    %53 = vector.load %arg4[%c2_23, %c0_24, %c0_25] : memref<3x64x128xbf16, #tpu.memory_space<vmem>>, vector<1x64x128xbf16>
    %54 = vector.shape_cast %53 : vector<1x64x128xbf16> to vector<64x128xbf16>
    %cst_26 = arith.constant dense<0.000000e+00> : vector<64x128xf32>
    %55 = tpu.matmul %52, %54, %cst_26 {dimension_numbers = #tpu.dot_dimension_numbers<[1], [0], [0], [1], [0, 0, 1, 1], [], []>} : vector<64x64xbf16>, vector<64x128xbf16>, vector<64x128xf32> -> vector<64x128xf32>
    %56 = arith.addf %49, %55 : vector<64x128xf32>
    %c0_27 = arith.constant 0 : index
    %c0_28 = arith.constant 0 : index
    %57 = vector.load %arg5[%c0_27, %c0_28] : memref<1x128xf32, #tpu.memory_space<vmem>>, vector<1x128xf32>
    %58 = vector.broadcast %57 : vector<1x128xf32> to vector<64x128xf32>
    %59 = arith.addf %56, %58 : vector<64x128xf32>
    %cst_29 = arith.constant 0.000000e+00 : f32
    %60 = vector.broadcast %cst_29 : f32 to vector<64x128xf32>
    %61 = arith.maximumf %59, %60 : vector<64x128xf32>
    %62 = vector.extract_strided_slice %61 {offsets = [0, 0], sizes = [64, 64], strides = [1, 1]} : vector<64x128xf32> to vector<64x64xf32>
    %63 = vector.extract_strided_slice %61 {offsets = [0, 64], sizes = [64, 64], strides = [1, 1]} : vector<64x128xf32> to vector<64x64xf32>
    %64 = arith.maximumf %62, %63 : vector<64x64xf32>
    %65 = vector.shape_cast %64 : vector<64x64xf32> to vector<4x2x8x64xf32>
    %66 = vector.extract_strided_slice %65 {offsets = [0, 0, 0, 0], sizes = [4, 1, 8, 64], strides = [1, 1, 1, 1]} : vector<4x2x8x64xf32> to vector<4x1x8x64xf32>
    %67 = vector.shape_cast %66 : vector<4x1x8x64xf32> to vector<4x8x64xf32>
    %68 = vector.extract_strided_slice %65 {offsets = [0, 1, 0, 0], sizes = [4, 1, 8, 64], strides = [1, 1, 1, 1]} : vector<4x2x8x64xf32> to vector<4x1x8x64xf32>
    %69 = vector.shape_cast %68 : vector<4x1x8x64xf32> to vector<4x8x64xf32>
    %70 = arith.maximumf %67, %69 : vector<4x8x64xf32>
    %cst_30 = arith.constant 0.000000e+00 : f32
    %71 = vector.broadcast %cst_30 : f32 to vector<1x8x64xf32>
    %72 = tpu.concatenate %71, %70, %71 in 0 : vector<1x8x64xf32>, vector<4x8x64xf32>, vector<1x8x64xf32> -> vector<6x8x64xf32>
    %73 = vector.extract_strided_slice %72 {offsets = [0, 0, 0], sizes = [4, 8, 64], strides = [1, 1, 1]} : vector<6x8x64xf32> to vector<4x8x64xf32>
    %74 = vector.shape_cast %73 : vector<4x8x64xf32> to vector<32x64xf32>
    %75 = arith.truncf %74 : vector<32x64xf32> to vector<32x64xbf16>
    %c0_31 = arith.constant 0 : index
    %c0_32 = arith.constant 0 : index
    %c0_33 = arith.constant 0 : index
    %76 = vector.load %arg6[%c0_31, %c0_32, %c0_33] : memref<3x64x128xbf16, #tpu.memory_space<vmem>>, vector<1x64x128xbf16>
    %77 = vector.shape_cast %76 : vector<1x64x128xbf16> to vector<64x128xbf16>
    %cst_34 = arith.constant dense<0.000000e+00> : vector<32x128xf32>
    %78 = tpu.matmul %75, %77, %cst_34 {dimension_numbers = #tpu.dot_dimension_numbers<[1], [0], [0], [1], [0, 0, 1, 1], [], []>} : vector<32x64xbf16>, vector<64x128xbf16>, vector<32x128xf32> -> vector<32x128xf32>
    %79 = vector.extract_strided_slice %72 {offsets = [1, 0, 0], sizes = [4, 8, 64], strides = [1, 1, 1]} : vector<6x8x64xf32> to vector<4x8x64xf32>
    %80 = vector.shape_cast %79 : vector<4x8x64xf32> to vector<32x64xf32>
    %81 = arith.truncf %80 : vector<32x64xf32> to vector<32x64xbf16>
    %c1_35 = arith.constant 1 : index
    %c0_36 = arith.constant 0 : index
    %c0_37 = arith.constant 0 : index
    %82 = vector.load %arg6[%c1_35, %c0_36, %c0_37] : memref<3x64x128xbf16, #tpu.memory_space<vmem>>, vector<1x64x128xbf16>
    %83 = vector.shape_cast %82 : vector<1x64x128xbf16> to vector<64x128xbf16>
    %cst_38 = arith.constant dense<0.000000e+00> : vector<32x128xf32>
    %84 = tpu.matmul %81, %83, %cst_38 {dimension_numbers = #tpu.dot_dimension_numbers<[1], [0], [0], [1], [0, 0, 1, 1], [], []>} : vector<32x64xbf16>, vector<64x128xbf16>, vector<32x128xf32> -> vector<32x128xf32>
    %85 = arith.addf %78, %84 : vector<32x128xf32>
    %86 = vector.extract_strided_slice %72 {offsets = [2, 0, 0], sizes = [4, 8, 64], strides = [1, 1, 1]} : vector<6x8x64xf32> to vector<4x8x64xf32>
    %87 = vector.shape_cast %86 : vector<4x8x64xf32> to vector<32x64xf32>
    %88 = arith.truncf %87 : vector<32x64xf32> to vector<32x64xbf16>
    %c2_39 = arith.constant 2 : index
    %c0_40 = arith.constant 0 : index
    %c0_41 = arith.constant 0 : index
    %89 = vector.load %arg6[%c2_39, %c0_40, %c0_41] : memref<3x64x128xbf16, #tpu.memory_space<vmem>>, vector<1x64x128xbf16>
    %90 = vector.shape_cast %89 : vector<1x64x128xbf16> to vector<64x128xbf16>
    %cst_42 = arith.constant dense<0.000000e+00> : vector<32x128xf32>
    %91 = tpu.matmul %88, %90, %cst_42 {dimension_numbers = #tpu.dot_dimension_numbers<[1], [0], [0], [1], [0, 0, 1, 1], [], []>} : vector<32x64xbf16>, vector<64x128xbf16>, vector<32x128xf32> -> vector<32x128xf32>
    %92 = arith.addf %85, %91 : vector<32x128xf32>
    %c0_43 = arith.constant 0 : index
    %c0_44 = arith.constant 0 : index
    %93 = vector.load %arg7[%c0_43, %c0_44] : memref<1x128xf32, #tpu.memory_space<vmem>>, vector<1x128xf32>
    %94 = vector.broadcast %93 : vector<1x128xf32> to vector<32x128xf32>
    %95 = arith.addf %92, %94 : vector<32x128xf32>
    %cst_45 = arith.constant 0.000000e+00 : f32
    %96 = vector.broadcast %cst_45 : f32 to vector<32x128xf32>
    %97 = arith.maximumf %95, %96 : vector<32x128xf32>
    %98 = vector.extract_strided_slice %97 {offsets = [0, 0], sizes = [32, 64], strides = [1, 1]} : vector<32x128xf32> to vector<32x64xf32>
    %99 = vector.extract_strided_slice %97 {offsets = [0, 64], sizes = [32, 64], strides = [1, 1]} : vector<32x128xf32> to vector<32x64xf32>
    %100 = arith.maximumf %98, %99 : vector<32x64xf32>
    %101 = vector.shape_cast %100 : vector<32x64xf32> to vector<2x2x8x64xf32>
    %102 = vector.extract_strided_slice %101 {offsets = [0, 0, 0, 0], sizes = [2, 1, 8, 64], strides = [1, 1, 1, 1]} : vector<2x2x8x64xf32> to vector<2x1x8x64xf32>
    %103 = vector.shape_cast %102 : vector<2x1x8x64xf32> to vector<2x8x64xf32>
    %104 = vector.extract_strided_slice %101 {offsets = [0, 1, 0, 0], sizes = [2, 1, 8, 64], strides = [1, 1, 1, 1]} : vector<2x2x8x64xf32> to vector<2x1x8x64xf32>
    %105 = vector.shape_cast %104 : vector<2x1x8x64xf32> to vector<2x8x64xf32>
    %106 = arith.maximumf %103, %105 : vector<2x8x64xf32>
    %107 = vector.extract_strided_slice %106 {offsets = [0, 0, 0], sizes = [1, 8, 64], strides = [1, 1, 1]} : vector<2x8x64xf32> to vector<1x8x64xf32>
    %108 = vector.shape_cast %107 : vector<1x8x64xf32> to vector<8x64xf32>
    %109 = arith.truncf %108 : vector<8x64xf32> to vector<8x64xbf16>
    %c0_46 = arith.constant 0 : index
    %c0_47 = arith.constant 0 : index
    %c0_48 = arith.constant 0 : index
    %110 = vector.load %arg8[%c0_46, %c0_47, %c0_48] : memref<2x64x64xbf16, #tpu.memory_space<vmem>>, vector<1x64x64xbf16>
    %111 = vector.shape_cast %110 : vector<1x64x64xbf16> to vector<64x64xbf16>
    %cst_49 = arith.constant dense<0.000000e+00> : vector<8x64xf32>
    %112 = tpu.matmul %109, %111, %cst_49 {dimension_numbers = #tpu.dot_dimension_numbers<[1], [0], [0], [1], [0, 0, 1, 1], [], []>} : vector<8x64xbf16>, vector<64x64xbf16>, vector<8x64xf32> -> vector<8x64xf32>
    %113 = vector.extract_strided_slice %106 {offsets = [1, 0, 0], sizes = [1, 8, 64], strides = [1, 1, 1]} : vector<2x8x64xf32> to vector<1x8x64xf32>
    %114 = vector.shape_cast %113 : vector<1x8x64xf32> to vector<8x64xf32>
    %115 = arith.truncf %114 : vector<8x64xf32> to vector<8x64xbf16>
    %c1_50 = arith.constant 1 : index
    %c0_51 = arith.constant 0 : index
    %c0_52 = arith.constant 0 : index
    %116 = vector.load %arg8[%c1_50, %c0_51, %c0_52] : memref<2x64x64xbf16, #tpu.memory_space<vmem>>, vector<1x64x64xbf16>
    %117 = vector.shape_cast %116 : vector<1x64x64xbf16> to vector<64x64xbf16>
    %cst_53 = arith.constant dense<0.000000e+00> : vector<8x64xf32>
    %118 = tpu.matmul %115, %117, %cst_53 {dimension_numbers = #tpu.dot_dimension_numbers<[1], [0], [0], [1], [0, 0, 1, 1], [], []>} : vector<8x64xbf16>, vector<64x64xbf16>, vector<8x64xf32> -> vector<8x64xf32>
    %119 = arith.addf %112, %118 : vector<8x64xf32>
    %c0_54 = arith.constant 0 : index
    %c0_55 = arith.constant 0 : index
    %120 = vector.load %arg9[%c0_54, %c0_55] : memref<1x64xf32, #tpu.memory_space<vmem>>, vector<1x64xf32>
    %121 = vector.broadcast %120 : vector<1x64xf32> to vector<8x64xf32>
    %122 = arith.addf %119, %121 : vector<8x64xf32>
    %cst_56 = arith.constant 0.000000e+00 : f32
    %123 = vector.broadcast %cst_56 : f32 to vector<8x64xf32>
    %124 = arith.maximumf %122, %123 : vector<8x64xf32>
    %125 = arith.truncf %124 : vector<8x64xf32> to vector<8x64xbf16>
    %c0_57 = arith.constant 0 : index
    %c0_58 = arith.constant 0 : index
    %126 = vector.load %arg10[%c0_57, %c0_58] : memref<64x512xbf16, #tpu.memory_space<vmem>>, vector<64x512xbf16>
    %cst_59 = arith.constant dense<0.000000e+00> : vector<8x512xf32>
    %127 = tpu.matmul %125, %126, %cst_59 {dimension_numbers = #tpu.dot_dimension_numbers<[1], [0], [0], [1], [0, 0, 1, 1], [], []>} : vector<8x64xbf16>, vector<64x512xbf16>, vector<8x512xf32> -> vector<8x512xf32>
    %c0_60 = arith.constant 0 : index
    %c0_61 = arith.constant 0 : index
    %128 = vector.load %arg11[%c0_60, %c0_61] : memref<1x512xf32, #tpu.memory_space<vmem>>, vector<1x512xf32>
    %129 = vector.broadcast %128 : vector<1x512xf32> to vector<8x512xf32>
    %130 = arith.addf %127, %129 : vector<8x512xf32>
    %cst_62 = arith.constant 0.000000e+00 : f32
    %131 = vector.broadcast %cst_62 : f32 to vector<8x512xf32>
    %132 = arith.maximumf %130, %131 : vector<8x512xf32>
    %133 = arith.truncf %132 : vector<8x512xf32> to vector<8x512xbf16>
    %c0_63 = arith.constant 0 : index
    %c0_64 = arith.constant 0 : index
    %134 = vector.load %arg12[%c0_63, %c0_64] : memref<512x256xbf16, #tpu.memory_space<vmem>>, vector<512x256xbf16>
    %cst_65 = arith.constant dense<0.000000e+00> : vector<8x256xf32>
    %135 = tpu.matmul %133, %134, %cst_65 {dimension_numbers = #tpu.dot_dimension_numbers<[1], [0], [0], [1], [0, 0, 1, 1], [], []>} : vector<8x512xbf16>, vector<512x256xbf16>, vector<8x256xf32> -> vector<8x256xf32>
    %c0_66 = arith.constant 0 : index
    %c0_67 = arith.constant 0 : index
    %136 = vector.load %arg13[%c0_66, %c0_67] : memref<1x256xf32, #tpu.memory_space<vmem>>, vector<1x256xf32>
    %137 = vector.broadcast %136 : vector<1x256xf32> to vector<8x256xf32>
    %138 = arith.addf %135, %137 : vector<8x256xf32>
    %cst_68 = arith.constant 0.000000e+00 : f32
    %139 = vector.broadcast %cst_68 : f32 to vector<8x256xf32>
    %140 = arith.maximumf %138, %139 : vector<8x256xf32>
    %141 = arith.truncf %140 : vector<8x256xf32> to vector<8x256xbf16>
    %c0_69 = arith.constant 0 : index
    %c0_70 = arith.constant 0 : index
    %142 = vector.load %arg14[%c0_69, %c0_70] : memref<256x128xbf16, #tpu.memory_space<vmem>>, vector<256x128xbf16>
    %cst_71 = arith.constant dense<0.000000e+00> : vector<8x128xf32>
    %143 = tpu.matmul %141, %142, %cst_71 {dimension_numbers = #tpu.dot_dimension_numbers<[1], [0], [0], [1], [0, 0, 1, 1], [], []>} : vector<8x256xbf16>, vector<256x128xbf16>, vector<8x128xf32> -> vector<8x128xf32>
    %c0_72 = arith.constant 0 : index
    %c0_73 = arith.constant 0 : index
    %144 = vector.load %arg15[%c0_72, %c0_73] : memref<1x128xf32, #tpu.memory_space<vmem>>, vector<1x128xf32>
    %145 = vector.broadcast %144 : vector<1x128xf32> to vector<8x128xf32>
    %146 = arith.addf %143, %145 : vector<8x128xf32>
    %c0_74 = arith.constant 0 : index
    %c0_75 = arith.constant 0 : index
    %147 = vector.load %arg16[%c0_74, %c0_75] : memref<8x128xf32, #tpu.memory_space<vmem>>, vector<8x128xf32>
    tpu.vector_store %arg16[%c0_74, %c0_75], %146 {strides = array<i32>} : memref<8x128xf32, #tpu.memory_space<vmem>>, vector<8x128xf32>,
    return
  }
  func.func @transform_0(%arg0: i32) -> (i32, i32, i32) {
    %c0_i32 = arith.constant 0 : i32
    %c0_i32_0 = arith.constant 0 : i32
    %c0_i32_1 = arith.constant 0 : i32
    return %c0_i32, %arg0, %c0_i32_0 : i32, i32, i32
  }
  func.func @transform_1(%arg0: i32) -> (i32, i32, i32) {
    %c0_i32 = arith.constant 0 : i32
    %c0_i32_0 = arith.constant 0 : i32
    %c0_i32_1 = arith.constant 0 : i32
    %c0_i32_2 = arith.constant 0 : i32
    return %c0_i32, %c0_i32_0, %c0_i32_1 : i32, i32, i32
  }
  func.func @transform_2(%arg0: i32) -> (i32, i32) {
    %c0_i32 = arith.constant 0 : i32
    %c0_i32_0 = arith.constant 0 : i32
    %c0_i32_1 = arith.constant 0 : i32
    return %c0_i32, %c0_i32_0 : i32, i32
  }
  func.func @transform_3(%arg0: i32) -> (i32, i32, i32) {
    %c0_i32 = arith.constant 0 : i32
    %c0_i32_0 = arith.constant 0 : i32
    %c0_i32_1 = arith.constant 0 : i32
    %c0_i32_2 = arith.constant 0 : i32
    return %c0_i32, %c0_i32_0, %c0_i32_1 : i32, i32, i32
  }
  func.func @transform_4(%arg0: i32) -> (i32, i32) {
    %c0_i32 = arith.constant 0 : i32
    %c0_i32_0 = arith.constant 0 : i32
    %c0_i32_1 = arith.constant 0 : i32
    return %c0_i32, %c0_i32_0 : i32, i32
  }
  func.func @transform_5(%arg0: i32) -> (i32, i32, i32) {
    %c0_i32 = arith.constant 0 : i32
    %c0_i32_0 = arith.constant 0 : i32
    %c0_i32_1 = arith.constant 0 : i32
    %c0_i32_2 = arith.constant 0 : i32
    return %c0_i32, %c0_i32_0, %c0_i32_1 : i32, i32, i32
  }
  func.func @transform_6(%arg0: i32) -> (i32, i32) {
    %c0_i32 = arith.constant 0 : i32
    %c0_i32_0 = arith.constant 0 : i32
    %c0_i32_1 = arith.constant 0 : i32
    return %c0_i32, %c0_i32_0 : i32, i32
  }
  func.func @transform_7(%arg0: i32) -> (i32, i32, i32) {
    %c0_i32 = arith.constant 0 : i32
    %c0_i32_0 = arith.constant 0 : i32
    %c0_i32_1 = arith.constant 0 : i32
    %c0_i32_2 = arith.constant 0 : i32
    return %c0_i32, %c0_i32_0, %c0_i32_1 : i32, i32, i32
  }
  func.func @transform_8(%arg0: i32) -> (i32, i32) {
    %c0_i32 = arith.constant 0 : i32
    %c0_i32_0 = arith.constant 0 : i32
    %c0_i32_1 = arith.constant 0 : i32
    return %c0_i32, %c0_i32_0 : i32, i32
  }
  func.func @transform_9(%arg0: i32) -> (i32, i32) {
    %c0_i32 = arith.constant 0 : i32
    %c0_i32_0 = arith.constant 0 : i32
    %c0_i32_1 = arith.constant 0 : i32
    return %c0_i32, %c0_i32_0 : i32, i32
  }
  func.func @transform_10(%arg0: i32) -> (i32, i32) {
    %c0_i32 = arith.constant 0 : i32
    %c0_i32_0 = arith.constant 0 : i32
    %c0_i32_1 = arith.constant 0 : i32
    return %c0_i32, %c0_i32_0 : i32, i32
  }
  func.func @transform_11(%arg0: i32) -> (i32, i32) {
    %c0_i32 = arith.constant 0 : i32
    %c0_i32_0 = arith.constant 0 : i32
    %c0_i32_1 = arith.constant 0 : i32
    return %c0_i32, %c0_i32_0 : i32, i32
  }
  func.func @transform_12(%arg0: i32) -> (i32, i32) {
    %c0_i32 = arith.constant 0 : i32
    %c0_i32_0 = arith.constant 0 : i32
    %c0_i32_1 = arith.constant 0 : i32
    return %c0_i32, %c0_i32_0 : i32, i32
  }
  func.func @transform_13(%arg0: i32) -> (i32, i32) {
    %c0_i32 = arith.constant 0 : i32
    %c0_i32_0 = arith.constant 0 : i32
    %c0_i32_1 = arith.constant 0 : i32
    return %c0_i32, %c0_i32_0 : i32, i32
  }
  func.func @transform_14(%arg0: i32) -> (i32, i32) {
    %c0_i32 = arith.constant 0 : i32
    %c0_i32_0 = arith.constant 0 : i32
    %c0_i32_1 = arith.constant 0 : i32
    return %c0_i32, %c0_i32_0 : i32, i32
  }
  func.func @transform_15(%arg0: i32) -> (i32, i32) {
    %c0_i32 = arith.constant 0 : i32
    %c0_i32_0 = arith.constant 0 : i32
    return %arg0, %c0_i32 : i32, i32
  }
}

</mosaic_0001>

<bundles_post_ra>
// kernel: forward.1
= control target key start
LH: loop header
LB: loop body
LE: loop exit
PB: predicated region body
PF: predicated region fallthrough
CT: control target
= control target key end

     0   :  { %20 = vsyncpa [#allocation3], 0  ;;  %s4064_s0 = inlined_call_operand.vmem [shape: f32[18,8,16], index: 0, kind: input, shape index: {}]   ;;  %s4065_s1 = inlined_call_operand.hbm [shape: bf16[3,16,128], index: 1, kind: input, shape index: {}]   ;;  %s4066_s2 = inlined_call_operand.vmem [shape: f32[1,128], index: 2, kind: input, shape index: {}]   ;;  %s4067_s3 = inlined_call_operand.hbm [shape: bf16[3,64,128], index: 3, kind: input, shape index: {}]   ;;  %s4068_s4 = inlined_call_operand.vmem [shape: f32[1,128], index: 4, kind: input, shape index: {}]   ;;  %s4069_s5 = inlined_call_operand.hbm [shape: bf16[3,64,128], index: 5, kind: input, shape index: {}]   ;;  %s4070_s6 = inlined_call_operand.vmem [shape: f32[1,128], index: 6, kind: input, shape index: {}]   ;;  %s4071_s7 = inlined_call_operand.hbm [shape: bf16[2,64,64], index: 7, kind: input, shape index: {}]   ;;  %s4072_s8 = inlined_call_operand.hbm [shape: f32[1,64], index: 8, kind: input, shape index: {}]   ;;  %s4073_s9 = inlined_call_operand.vmem [shape: bf16[64,512], index: 9, kind: input, shape index: {}]   ;;  %s4074_s10 = inlined_call_operand.hbm [shape: f32[1,512], index: 10, kind: input, shape index: {}]   ;;  %s4075_s11 = inlined_call_operand.hbm [shape: bf16[512,256], index: 11, kind: input, shape index: {}]   ;;  %s4076_s12 = inlined_call_operand.hbm [shape: f32[1,256], index: 12, kind: input, shape index: {}]   ;;  %s4077_s13 = inlined_call_operand.vmem [shape: bf16[256,128], index: 13, kind: input, shape index: {}]   ;;  %s4078_s14 = inlined_call_operand.hbm [shape: f32[1,128], index: 14, kind: input, shape index: {}]   ;;  %s4079_s15 = inlined_call_operand.vmem [shape: f32[8,128], index: 15, kind: output, shape index: {}]  }
   0x1   :  { %21 = vsyncpa [#allocation5], 0 }
   0x2   :  { %22 = vsyncpa [#allocation8], 0 }
   0x3   :  { %23 = vsyncpa [#allocation11], 0 }
   0x4   :  { %24 = vsyncpa [#allocation14], 0  ;;  %s3438_s18 = smov [#allocation4]   ;;  %s3439_s20 = smov [#allocation7]  }
   0x5   :  { %s46_s19 = sshll.u32 %s3438_s18, 4  ;;  %s74_s21 = sshll.u32 %s3439_s20, 4  ;;  %s47_s19 = int_to_ptr.vmem [resolvable:$true] %s46_s19  ;;  %s3534_s21 = int_to_ptr.vmem [resolvable:$true] %s74_s21 }
   0x6   :  { %s3230_s24 = scalar_lea.hbm %s4067_s3, 1536 }
   0x7   :  { %p3231_p0 = scmp.ne.s32.totalorder %s4067_s3, %s3230_s24  ;;  %p3234_p1 = scmp.lt.u32.totalorder %s3230_s24, %s4067_s3 }
   0x9   :  { %p3236_p2 = pnand %p3234_p1, %p3231_p0 }
   0xb   :  { %3239 = shalt.err (!%p3236_p2)
}
   0xc   :  { %s3240_s29 = scalar_lea.vmem %s47_s19, 1536  ;;  %p3245_p4 = scmp.lt.s32.totalorder %s47_s19, %s47_s19 }
   0xd   :  { %p3241_p3 = scmp.ne.s32.totalorder %s47_s19, %s3240_s29  ;;  %p3246_p5 = scmp.lt.s32.totalorder %s3240_s29, %s3240_s29 }
   0xf   :  { %p3247_p6 = por %p3246_p5, %p3245_p4 }
  0x11   :  { %p3248_p7 = pnand %p3247_p6, %p3241_p3 }
  0x13   :  { %3251 = shalt.err (!%p3248_p7)
}
  0x14   :  { %s3440_s30 = smov 64   ;;  %s3441_s16 = smov 4  }
  0x15   :  { %52 = dma.hbm_to_vmem [thread:$0]  %s4067_s3, 1536, %s47_s19, [#allocation5], %s3440_s30, %s3440_s30, %s3441_s16  }
  0x16   :  { %s3252_s23 = scalar_lea.hbm %s4071_s7, 1024 }
  0x17   :  { %p3253_p8 = scmp.ne.s32.totalorder %s4071_s7, %s3252_s23  ;;  %p3256_p9 = scmp.lt.u32.totalorder %s3252_s23, %s4071_s7 }
  0x19   :  { %p3258_p10 = pnand %p3256_p9, %p3253_p8 }
  0x1b   :  { %3261 = shalt.err (!%p3258_p10)
}
  0x1c   :  { %s3262_s28 = scalar_lea.vmem %s3534_s21, 1024  ;;  %p3267_p12 = scmp.lt.s32.totalorder %s3534_s21, %s3534_s21 }
  0x1d   :  { %p3263_p11 = scmp.ne.s32.totalorder %s3534_s21, %s3262_s28  ;;  %p3268_p13 = scmp.lt.s32.totalorder %s3262_s28, %s3262_s28 }
  0x1f   :  { %p3269_p0 = por %p3268_p13, %p3267_p12 }
  0x21   :  { %p3270_p1 = pnand %p3269_p0, %p3263_p11 }
  0x23   :  { %3273 = shalt.err (!%p3270_p1)
}
  0x24   :  { %80 = dma.hbm_to_vmem [thread:$0]  %s4071_s7, 1024, %s3534_s21, [#allocation8], %s3440_s30, %s3440_s30, %s3441_s16  }
  0x25   :  { %s3442_s29 = smov [#allocation10]   ;;  %s3443_s18 = smov [#allocation13]  }
  0x26   :  { %s99_s17 = sshll.u32 %s3442_s29, 4  ;;  %s121_s20 = sshll.u32 %s3443_s18, 4  ;;  %s100_s17 = int_to_ptr.vmem [resolvable:$true] %s99_s17  ;;  %s122_s20 = int_to_ptr.vmem [resolvable:$true] %s121_s20 }
  0x27   :  { %s3274_s24 = scalar_lea.hbm %s4074_s10, 64 }
  0x28   :  { %p3275_p2 = scmp.ne.s32.totalorder %s4074_s10, %s3274_s24  ;;  %p3278_p3 = scmp.lt.u32.totalorder %s3274_s24, %s4074_s10 }
  0x2a   :  { %p3280_p4 = pnand %p3278_p3, %p3275_p2 }
  0x2c   :  { %3283 = shalt.err (!%p3280_p4)
}
  0x2d   :  { %s3284_s7 = scalar_lea.vmem %s100_s17, 64  ;;  %p3289_p6 = scmp.lt.s32.totalorder %s100_s17, %s100_s17 }
  0x2e   :  { %p3285_p5 = scmp.ne.s32.totalorder %s100_s17, %s3284_s7  ;;  %p3290_p7 = scmp.lt.s32.totalorder %s3284_s7, %s3284_s7 }
  0x30   :  { %p3291_p8 = por %p3290_p7, %p3289_p6 }
  0x32   :  { %p3292_p9 = pnand %p3291_p8, %p3285_p5 }
  0x34   :  { %3295 = shalt.err (!%p3292_p9)
}
  0x35   :  { %102 = dma.hbm_to_vmem [thread:$0]  %s4074_s10, 64, %s100_s17, [#allocation11]  }
  0x36   :  { %s3296_s18 = scalar_lea.hbm %s4076_s12, 32 }
  0x37   :  { %p3297_p10 = scmp.ne.s32.totalorder %s4076_s12, %s3296_s18  ;;  %p3300_p11 = scmp.lt.u32.totalorder %s3296_s18, %s4076_s12 }
  0x39   :  { %p3302_p12 = pnand %p3300_p11, %p3297_p10 }
  0x3b   :  { %3305 = shalt.err (!%p3302_p12)
}
  0x3c   :  { %s3306_s26 = scalar_lea.vmem %s122_s20, 32  ;;  %p3311_p0 = scmp.lt.s32.totalorder %s122_s20, %s122_s20 }
  0x3d   :  { %p3307_p13 = scmp.ne.s32.totalorder %s122_s20, %s3306_s26  ;;  %p3312_p1 = scmp.lt.s32.totalorder %s3306_s26, %s3306_s26 }
  0x3f   :  { %p3313_p2 = por %p3312_p1, %p3311_p0 }
  0x41   :  { %p3314_p3 = pnand %p3313_p2, %p3307_p13 }
  0x43   :  { %3317 = shalt.err (!%p3314_p3)
}
  0x44   :  { %124 = dma.hbm_to_vmem [thread:$0]  %s4076_s12, 32, %s122_s20, [#allocation14]  }
  0x45   :  { %s3444_s27 = smov [#allocation2]   ;;  %s3445_s7 = smov [#allocation6]  }
  0x46   :  { %s32_s28 = sshll.u32 %s3444_s27, 4  ;;  %s60_s21 = sshll.u32 %s3445_s7, 4  ;;  %s33_s28 = int_to_ptr.vmem [resolvable:$true] %s32_s28  ;;  %s3595_s21 = int_to_ptr.vmem [resolvable:$true] %s60_s21 }
  0x47   :  { %s3318_s29 = scalar_lea.hbm %s4065_s1, 384 }
  0x48   :  { %p3319_p4 = scmp.ne.s32.totalorder %s4065_s1, %s3318_s29  ;;  %p3322_p5 = scmp.lt.u32.totalorder %s3318_s29, %s4065_s1 }
  0x4a   :  { %p3324_p6 = pnand %p3322_p5, %p3319_p4 }
  0x4c   :  { %3327 = shalt.err (!%p3324_p6)
}
  0x4d   :  { %s3328_s12 = scalar_lea.vmem %s33_s28, 384  ;;  %p3333_p8 = scmp.lt.s32.totalorder %s33_s28, %s33_s28 }
  0x4e   :  { %p3329_p7 = scmp.ne.s32.totalorder %s33_s28, %s3328_s12  ;;  %p3334_p9 = scmp.lt.s32.totalorder %s3328_s12, %s3328_s12 }
  0x50   :  { %p3335_p10 = por %p3334_p9, %p3333_p8 }
  0x52   :  { %p3336_p11 = pnand %p3335_p10, %p3329_p7 }
  0x54   :  { %3339 = shalt.err (!%p3336_p11)
}
  0x55   :  { %38 = dma.hbm_to_vmem [thread:$0]  %s4065_s1, 384, %s33_s28, [#allocation3], %s3440_s30, %s3440_s30, %s3441_s16  }
  0x56   :  { %s3340_s17 = scalar_lea.hbm %s4069_s5, 1536 }
  0x57   :  { %p3341_p12 = scmp.ne.s32.totalorder %s4069_s5, %s3340_s17  ;;  %p3344_p13 = scmp.lt.u32.totalorder %s3340_s17, %s4069_s5 }
  0x59   :  { %p3346_p0 = pnand %p3344_p13, %p3341_p12 }
  0x5b   :  { %3349 = shalt.err (!%p3346_p0)
}
  0x5c   :  { %s3350_s29 = scalar_lea.vmem %s3595_s21, 1536  ;;  %p3355_p2 = scmp.lt.s32.totalorder %s3595_s21, %s3595_s21 }
  0x5d   :  { %p3351_p1 = scmp.ne.s32.totalorder %s3595_s21, %s3350_s29  ;;  %p3356_p3 = scmp.lt.s32.totalorder %s3350_s29, %s3350_s29 }
  0x5f   :  { %p3357_p4 = por %p3356_p3, %p3355_p2 }
  0x61   :  { %p3358_p5 = pnand %p3357_p4, %p3351_p1 }
  0x63   :  { %3361 = shalt.err (!%p3358_p5)
}
  0x64   :  { %66 = dma.hbm_to_vmem [thread:$0]  %s4069_s5, 1536, %s3595_s21, [#allocation5], %s3440_s30, %s3440_s30, %s3441_s16  }
  0x65   :  { %s3446_s18 = smov [#allocation9]   ;;  %s3447_s23 = smov [#allocation12]  }
  0x66   :  { %s87_s22 = sshll.u32 %s3446_s18, 4  ;;  %s108_s24 = sshll.u32 %s3447_s23, 4  ;;  %s88_s22 = int_to_ptr.vmem [resolvable:$true] %s87_s22  ;;  %s3632_s24 = int_to_ptr.vmem [resolvable:$true] %s108_s24 }
  0x67   :  { %s3362_s25 = scalar_lea.hbm %s4072_s8, 16 }
  0x68   :  { %p3363_p6 = scmp.ne.s32.totalorder %s4072_s8, %s3362_s25  ;;  %p3366_p7 = scmp.lt.u32.totalorder %s3362_s25, %s4072_s8 }
  0x6a   :  { %p3368_p8 = pnand %p3366_p7, %p3363_p6 }
  0x6c   :  { %3371 = shalt.err (!%p3368_p8)
}
  0x6d   :  { %s3372_s5 = scalar_lea.vmem %s88_s22, 16  ;;  %s3376_s16 = scalar_lea.vmem %s88_s22, 32 }
  0x6e   :  { %p3373_p9 = scmp.ne.s32.totalorder %s88_s22, %s3372_s5  ;;  %p3377_p10 = scmp.lt.s32.totalorder %s88_s22, %s88_s22 }
  0x6f   :  { %p3378_p11 = scmp.lt.s32.totalorder %s3376_s16, %s3372_s5 }
  0x71   :  { %p3379_p12 = por %p3378_p11, %p3377_p10 }
  0x73   :  { %p3380_p13 = pnand %p3379_p12, %p3373_p9 }
  0x75   :  { %3383 = shalt.err (!%p3380_p13)
}
  0x76   :  { %90 = dma.hbm_to_vmem [thread:$0]  %s4072_s8, 16, %s88_s22, [#allocation8]  }
  0x77   :  { %s3384_s29 = scalar_lea.hbm %s4075_s11, 8192 }
  0x78   :  { %p3385_p0 = scmp.ne.s32.totalorder %s4075_s11, %s3384_s29  ;;  %p3388_p1 = scmp.lt.u32.totalorder %s3384_s29, %s4075_s11 }
  0x7a   :  { %p3390_p2 = pnand %p3388_p1, %p3385_p0 }
  0x7c   :  { %3393 = shalt.err (!%p3390_p2)
}
  0x7d   :  { %s3394_s12 = scalar_lea.vmem %s3632_s24, 8192  ;;  %p3399_p4 = scmp.lt.s32.totalorder %s3632_s24, %s3632_s24 }
  0x7e   :  { %p3395_p3 = scmp.ne.s32.totalorder %s3632_s24, %s3394_s12  ;;  %p3400_p5 = scmp.lt.s32.totalorder %s3394_s12, %s3394_s12 }
  0x80   :  { %p3401_p6 = por %p3400_p5, %p3399_p4 }
  0x82   :  { %p3402_p7 = pnand %p3401_p6, %p3395_p3 }
  0x84   :  { %3405 = shalt.err (!%p3402_p7)
}
  0x85   :  { %s3448_s8 = smov 128   ;;  %s3449_s22 = smov 8  }
  0x86   :  { %114 = dma.hbm_to_vmem [thread:$0]  %s4075_s11, 8192, %s3632_s24, [#allocation11], %s3448_s8, %s3448_s8, %s3449_s22  }
  0x87   :  { %s3450_s26 = smov [#allocation15]   ;;  %s3406_s5 = scalar_lea.hbm %s4078_s14, 16 }
  0x88   :  { %s133_s10 = sshll.u32 %s3450_s26, 4  ;;  %p3407_p8 = scmp.ne.s32.totalorder %s4078_s14, %s3406_s5  ;;  %s134_s10 = int_to_ptr.vmem [resolvable:$true] %s133_s10 }
  0x89   :  { %p3410_p9 = scmp.lt.u32.totalorder %s3406_s5, %s4078_s14 }
  0x8b   :  { %p3412_p10 = pnand %p3410_p9, %p3407_p8 }
  0x8d   :  { %3415 = shalt.err (!%p3412_p10)
}
  0x8e   :  { %s3416_s19 = scalar_lea.vmem %s134_s10, 16  ;;  %s3420_s11 = scalar_lea.vmem %s134_s10, 32 }
  0x8f   :  { %p3417_p11 = scmp.ne.s32.totalorder %s134_s10, %s3416_s19  ;;  %p3421_p12 = scmp.lt.s32.totalorder %s134_s10, %s134_s10 }
  0x90   :  { %p3422_p13 = scmp.lt.s32.totalorder %s3420_s11, %s3416_s19 }
  0x92   :  { %p3423_p0 = por %p3422_p13, %p3421_p12 }
  0x94   :  { %p3424_p1 = pnand %p3423_p0, %p3417_p11 }
  0x96   :  { %3427 = shalt.err (!%p3424_p1)
}
  0x97   :  { %136 = dma.hbm_to_vmem [thread:$0]  %s4078_s14, 16, %s134_s10, [#allocation14]  }
  0x98   :  { %3428 = dma.done.wait [#allocation3], 384  }
  0x99   :  { %3429 = vsyncadd [#allocation3], 4294966912 }
  0x9a   :  { %3430 = dma.done.wait [#allocation5], 3072  }
  0x9b   :  { %3431 = vsyncadd [#allocation5], 4294964224 }
  0x9c   :  { %3432 = dma.done.wait [#allocation8], 1040  }
  0x9d   :  { %3433 = vsyncadd [#allocation8], 4294966256 }
  0x9e   :  { %3434 = dma.done.wait [#allocation11], 8256  }
  0x9f   :  { %3435 = vsyncadd [#allocation11], 4294959040 }
  0xa0   :  { %3436 = dma.done.wait [#allocation14], 48  }
  0xa1   :  { %3437 = vsyncadd [#allocation14], 4294967248  ;;  %v3059_v0 = vld [vmem:[#allocation2 + $0x8] sm:$0xff]   ;;  %v3060_v1 = vld [vmem:[#allocation2] sm:$0xff]   ;;  %vm210_vm0 = vcmask 130048   ;;  %v3451_v58 = vmov 0.0  }
  0xa2   :  { %2747 = vmatprep.subr.bf16.mxu1 %v3059_v0  ;;  %v166_v2 = vld [vmem:[%s4064_s0 + $0x8] sm:$0xff]  ;;  %v167_v3 = vld [vmem:[%s4064_s0 + $0x10] sm:$0xff]  ;;  %v168_v4 = vld [vmem:[%s4064_s0 + $0x18] sm:$0xff]  ;;  %2765 = vmatprep.subr.bf16.mxu0 %v3060_v1  ;;  %vm761_vm1 = vcmask 523264   ;;  %vm3452_vm2 = vmmov 0  }
  0xa3   :  { %2748 = vmatpush3.bf16.msra.mxu1 %v3059_v0  ;;  %v169_v5 = vld [vmem:[%s4064_s0 + $0x20] sm:$0xff]  ;;  %v184_v6 = vpack.c.bf16 %v168_v4, %v167_v3  ;;  %v193_v7 = vpack.c.bf16 %v167_v3, %v166_v2  ;;  %2766 = vmatpush3.bf16.msra.mxu0 %v3060_v1  ;;  %v3061_v11 = vld [vmem:[#allocation2 + $0x10] sm:$0xff]   ;;  %v170_v12 = vld [vmem:[%s4064_s0 + $0x28] sm:$0xff] }
  0xa4   :  { %v165_v8 = vld [vmem:[%s4064_s0] sm:$0xff]  ;;  %v194_v9 = vpack.c.bf16 %v169_v5, %v168_v4  ;;  %2909 = vmatprep.subr.bf16.mxu1 %v3060_v1  ;;  %v171_v13 = vld [vmem:[%s4064_s0 + $0x30] sm:$0xff]  ;;  %v185_v14 = vpack.c.bf16 %v170_v12, %v169_v5  ;;  %2783 = vmatprep.subr.bf16.mxu0 %v3061_v11  ;;  %v172_v16 = vld [vmem:[%s4064_s0 + $0x38] sm:$0xff] }
  0xa5   :  { %v183_v10 = vpack.c.bf16 %v166_v2, %v165_v8  ;;  %2749 = vmatprep.mubr.msk.bf16.mxu1 %vm210_vm0, %v193_v7  ;;  %v195_v15 = vpack.c.bf16 %v171_v13, %v170_v12  ;;  %v173_v17 = vld [vmem:[%s4064_s0 + $0x40] sm:$0xff]  ;;  %v174_v18 = vld [vmem:[%s4064_s0 + $0x48] sm:$0xff]  ;;  %v175_v19 = vld [vmem:[%s4064_s0 + $0x50] sm:$0xff]  ;;  %v186_v21 = vpack.c.bf16 %v172_v16, %v171_v13 }
  0xa6   :  { %2750 = vmatmul.mubr.msk.bf16.vlgmr.msra.gmra.mrb[0].mxu1 %vm210_vm0, %v194_v9  ;;  %v196_v20 = vpack.c.bf16 %v173_v17, %v172_v16  ;;  %v197_v22 = vpack.c.bf16 %v175_v19, %v174_v18  ;;  %v176_v23 = vld [vmem:[%s4064_s0 + $0x58] sm:$0xff]  ;;  %v177_v24 = vld [vmem:[%s4064_s0 + $0x60] sm:$0xff]  ;;  %v178_v25 = vld [vmem:[%s4064_s0 + $0x68] sm:$0xff]  ;;  %v187_v32 = vpack.c.bf16 %v174_v18, %v173_v17 }
  0xa7   :  { %2767 = vmatprep.mubr.msk.bf16.mxu0 %vm210_vm0, %v183_v10  ;;  %2910 = vmatpush3.bf16.msra.mxu1 %v3060_v1  ;;  %v179_v26 = vld [vmem:[%s4064_s0 + $0x70] sm:$0xff]  ;;  %v198_v27 = vpack.c.bf16 %v177_v24, %v176_v23  ;;  %v180_v29 = vld [vmem:[%s4064_s0 + $0x78] sm:$0xff]  ;;  %v181_v30 = vld [vmem:[%s4064_s0 + $0x80] sm:$0xff]  ;;  %v188_v33 = vpack.c.bf16 %v176_v23, %v175_v19  ;;  %v189_v34 = vpack.c.bf16 %v178_v25, %v177_v24 }
  0xa8   :  { %2768 = vmatmul.mubr.msk.bf16.vlgmr.msra.gmra.mrb[0].mxu0 %vm210_vm0, %v184_v6  ;;  %2753 = vmatprep.mubr.msk.bf16.mxu1 %vm210_vm0, %v195_v15  ;;  %v199_v28 = vpack.c.bf16 %v179_v26, %v178_v25  ;;  %v200_v31 = vpack.c.bf16 %v181_v30, %v180_v29  ;;  %v190_v35 = vpack.c.bf16 %v180_v29, %v179_v26  ;;  %v182_v36 = vld [vmem:[%s4064_s0 + $0x88] sm:$0xff]  ;;  %v3062_v47 = vld [vmem:[#allocation4 + $0x20] sm:$0xff]   ;;  %v3756_v49 = vld [vmem:[%s4066_s2] ss:$0 sm:$0xff] }
  0xa9   :  { %2784 = vmatpush3.bf16.msra.mxu0 %v3061_v11  ;;  %2771 = vmatprep.mubr.msk.bf16.mxu0 %vm210_vm0, %v185_v14  ;;  %v459_v37 = vpack.c.bf16 %v182_v36, %v181_v30  ;;  %v3063_v57 = vld [vmem:[#allocation4 + $0x28] sm:$0xff]   ;;  %v3064_v1 = vld [vmem:[#allocation4 + $0x30] sm:$0xff]   ;;  %v3065_v13 = vld [vmem:[#allocation4 + $0x38] sm:$0xff]  }
  0xaa   :  { %2801 = vmatprep.subr.bf16.mxu1 %v3062_v47  ;;  %2885 = vmatprep.subr.bf16.mxu0 %v3451_v58 }
  0xae   :  { %2754 = vmatmul.mubr.msk.bf16.gmra.mrb[4].mxu1 %vm210_vm0, %v196_v20 }
  0xaf   :  { %2757 = vmatprep.mubr.msk.bf16.mxu1 %vm210_vm0, %v197_v22 }
  0xb0   :  { %2772 = vmatmul.mubr.msk.bf16.gmra.mrb[4].mxu0 %vm210_vm0, %v186_v21 }
  0xb1   :  { %2785 = vmatprep.mubr.msk.bf16.mxu0 %vm210_vm0, %v184_v6 }
  0xb6   :  { %2758 = vmatmul.mubr.msk.bf16.gmra.mrb[8].mxu1 %vm210_vm0, %v198_v27 }
  0xb7   :  { %2761 = vmatprep.mubr.msk.bf16.mxu1 %vm210_vm0, %v199_v28 }
  0xb8   :  { %2786 = vmatmul.mubr.msk.bf16.vlgmr.msra.gmra.mrb[0].mxu0 %vm210_vm0, %v185_v14 }
  0xb9   :  { %2789 = vmatprep.mubr.msk.bf16.mxu0 %vm210_vm0, %v186_v21 }
  0xbe   :  { %2762 = vmatmul.mubr.msk.bf16.gmra.mrb[12].mxu1 %vm210_vm0, %v200_v31 }
  0xbf   :  { %2775 = vmatprep.mubr.msk.bf16.mxu1 %vm210_vm0, %v187_v32 }
  0xc0   :  { %2790 = vmatmul.mubr.msk.bf16.gmra.mrb[4].mxu0 %vm210_vm0, %v187_v32 }
  0xc1   :  { %2793 = vmatprep.mubr.msk.bf16.mxu0 %vm210_vm0, %v188_v33 }
  0xc6   :  { %2776 = vmatmul.mubr.msk.bf16.vlgmr.msra.gmra.mrb[8].mxu1 %vm210_vm0, %v188_v33 }
  0xc7   :  { %2779 = vmatprep.mubr.msk.bf16.mxu1 %vm210_vm0, %v189_v34  ;;  %2802 = vmatpush3.bf16.msra.mxu1 %v3062_v47 }
  0xc8   :  { %2794 = vmatmul.mubr.msk.bf16.gmra.mrb[8].mxu0 %vm210_vm0, %v189_v34  ;;  %2803 = vmatprep.subr.bf16.mxu1 %v3063_v57 }
  0xc9   :  { %2797 = vmatprep.mubr.msk.bf16.mxu0 %vm210_vm0, %v190_v35 }
  0xcb   :  { %2804 = vmatpush3.bf16.msra.mxu1 %v3063_v57 }
  0xcc   :  { %2805 = vmatprep.subr.bf16.mxu1 %v3064_v1 }
  0xce   :  { %2780 = vmatmul.mubr.msk.bf16.gmra.mrb[12].mxu1 %vm210_vm0, %v190_v35 }
  0xcf   :  { %2806 = vmatpush3.bf16.msra.mxu1 %v3064_v1 }
  0xd0   :  { %2798 = vmatmul.mubr.msk.bf16.gmra.mrb[12].mxu0 %vm210_vm0, %v459_v37  ;;  %2807 = vmatprep.subr.bf16.mxu1 %v3065_v13 }
  0xd1   :  { %2893 = vmatprep.mubr.msk.bf16.mxu0 %vm3452_vm2, %v3451_v58 }
  0xd3   :  { %2808 = vmatpush3.bf16.msra.mxu1 %v3065_v13 }
 0x179   :  { %v2751_v38 = vpop.f32.mrb[0].mxu1 }
 0x17a   :  { %v269_v39 = vpop.f32.mrb[1].mxu1 }
 0x17b   :  { %v2752_v40 = vpop.f32.mrb[2].mxu1 }
 0x17c   :  { %v272_v41 = vpop.f32.mrb[3].mxu1 }
 0x181   :  { %v2755_v42 = vpop.f32.mrb[4].mxu1 }
 0x182   :  { %v285_v43 = vpop.f32.mrb[5].mxu1 }
 0x183   :  { %v2756_v44 = vpop.f32.mrb[6].mxu1 }
 0x184   :  { %v288_v45 = vpop.f32.mrb[7].mxu1 }
 0x18b   :  { %v2787_v46 = vpop.f32.mrb[0].mxu0 }
 0x18c   :  { %v2911_v48 = vadd.f32 %v2787_v46, %v2751_v38  ;;  %v506_v50 = vpop.f32.mrb[1].mxu0 }
 0x18d   :  { %v2912_v51 = vadd.f32 %v506_v50, %v269_v39  ;;  %v2788_v52 = vpop.f32.mrb[2].mxu0  ;;  %v3819_v39 = vld [vmem:[#allocation4] sm:$0xff]  }
 0x18e   :  { %v2913_v53 = vadd.f32 %v2788_v52, %v2752_v40  ;;  %v509_v54 = vpop.f32.mrb[3].mxu0  ;;  %v3769_v61 = vadd.f32 %v2911_v48, %v3756_v49  ;;  %2817 = vmatprep.subr.bf16.mxu1 %v3819_v39 }
 0x18f   :  { %v2914_v55 = vadd.f32 %v509_v54, %v272_v41  ;;  %v3759_v56 = vadd.f32 %v2912_v51, %v3756_v49 }
 0x190   :  { %v3763_v59 = vadd.f32 %v2913_v53, %v3756_v49  ;;  %v610_v11 = vmax.f32 %v3769_v61, 0.0 }
 0x191   :  { %v3766_v60 = vadd.f32 %v2914_v55, %v3756_v49  ;;  %v608_v63 = vmax.f32 %v3759_v56, 0.0 }
 0x192   :  { %v611_v4 = vmax.f32 %v3763_v59, 0.0 }
 0x193   :  { %v2791_v62 = vpop.f32.mrb[4].mxu0  ;;  %v609_v0 = vmax.f32 %v3766_v60, 0.0 }
 0x194   :  { %v2915_v2 = vadd.f32 %v2791_v62, %v2755_v42  ;;  %v522_v3 = vpop.f32.mrb[5].mxu0  ;;  %v2994_v16 = vpack.i.bf16 %v611_v4, %v610_v11 }
 0x195   :  { %v2916_v5 = vadd.f32 %v522_v3, %v285_v43  ;;  %v2792_v6 = vpop.f32.mrb[6].mxu0  ;;  %v2989_v7 = vpack.i.bf16 %v609_v0, %v608_v63 }
 0x196   :  { %v2917_v8 = vadd.f32 %v2792_v6, %v2756_v44  ;;  %v525_v9 = vpop.f32.mrb[7].mxu0  ;;  %v3779_v10 = vadd.f32 %v2915_v2, %v3756_v49 }
 0x197   :  { %v2918_v12 = vadd.f32 %v525_v9, %v288_v45  ;;  %2990 = vrot.lane.b32.xlu0 %v2989_v7, %s3440_s30  ;;  %v3794_v17 = vadd.f32 %v2916_v5, %v3756_v49 }
 0x198   :  { %v3784_v14 = vadd.f32 %v2917_v8, %v3756_v49  ;;  %v614_v19 = vmax.f32 %v3779_v10, 0.0 }
 0x199   :  { %v3787_v15 = vadd.f32 %v2918_v12, %v3756_v49  ;;  %v2777_v18 = vpop.f32.mrb[8].mxu1  ;;  %v612_v31 = vmax.f32 %v3794_v17, 0.0 }
 0x19a   :  { %v615_v20 = vmax.f32 %v3784_v14, 0.0  ;;  %v428_v22 = vpop.f32.mrb[9].mxu1 }
 0x19b   :  { %2995 = vrot.lane.b32.xlu0 %v2994_v16, %s3440_s30  ;;  %v2795_v21 = vpop.f32.mrb[8].mxu0  ;;  %v613_v23 = vmax.f32 %v3787_v15, 0.0  ;;  %v2778_v26 = vpop.f32.mrb[10].mxu1  ;;  %v3067_v15 = vld [vmem:[#allocation4 + $0x8] sm:$0xff]  }
 0x19c   :  { %v2919_v24 = vadd.f32 %v2795_v21, %v2777_v18  ;;  %v538_v25 = vpop.f32.mrb[9].mxu0  ;;  %v2999_v27 = vpack.i.bf16 %v615_v20, %v614_v19  ;;  %v431_v30 = vpop.f32.mrb[11].mxu1 }
 0x19d   :  { %v2920_v28 = vadd.f32 %v538_v25, %v428_v22  ;;  %v2796_v29 = vpop.f32.mrb[10].mxu0  ;;  %v3004_v38 = vpack.i.bf16 %v613_v23, %v612_v31 }
 0x19e   :  { %v3806_v32 = vadd.f32 %v2919_v24, %v3756_v49  ;;  %v2921_v33 = vadd.f32 %v2796_v29, %v2778_v26  ;;  %3000 = vrot.lane.b32.xlu1 %v2999_v27, %s3440_s30  ;;  %v541_v34 = vpop.f32.mrb[11].mxu0 }
 0x19f   :  { %v3810_v35 = vadd.f32 %v2920_v28, %v3756_v49  ;;  %v2922_v36 = vadd.f32 %v541_v34, %v431_v30 }
 0x1a0   :  { %v3813_v37 = vadd.f32 %v2921_v33, %v3756_v49  ;;  %v618_v41 = vmax.f32 %v3806_v32, 0.0 }
 0x1a1   :  { %v3822_v40 = vadd.f32 %v2922_v36, %v3756_v49  ;;  %v2781_v43 = vpop.f32.mrb[12].mxu1  ;;  %v616_v44 = vmax.f32 %v3810_v35, 0.0 }
 0x1a2   :  { %v619_v42 = vmax.f32 %v3813_v37, 0.0  ;;  %3005 = vrot.lane.b32.xlu1 %v3004_v38, %s3440_s30  ;;  %v444_v47 = vpop.f32.mrb[13].mxu1 }
 0x1a3   :  { %v617_v45 = vmax.f32 %v3822_v40, 0.0  ;;  %v2799_v46 = vpop.f32.mrb[12].mxu0  ;;  %v2782_v51 = vpop.f32.mrb[14].mxu1 }
 0x1a4   :  { %v2923_v48 = vadd.f32 %v2799_v46, %v2781_v43  ;;  %v554_v50 = vpop.f32.mrb[13].mxu0  ;;  %v3009_v52 = vpack.i.bf16 %v619_v42, %v618_v41  ;;  %v447_v55 = vpop.f32.mrb[15].mxu1 }
 0x1a5   :  { %v2924_v53 = vadd.f32 %v554_v50, %v444_v47  ;;  %v2800_v54 = vpop.f32.mrb[14].mxu0  ;;  %v3014_v57 = vpack.i.bf16 %v617_v45, %v616_v44 }
 0x1a6   :  { %v3839_v62 = vadd.f32 %v2923_v48, %v3756_v49  ;;  %v2925_v1 = vadd.f32 %v2800_v54, %v2782_v51  ;;  %3010 = vrot.lane.b32.xlu1 %v3009_v52, %s3440_s30  ;;  %v557_v2 = vpop.f32.mrb[15].mxu0 }
 0x1a7   :  { %v3843_v3 = vadd.f32 %v2924_v53, %v3756_v49  ;;  %v2926_v5 = vadd.f32 %v557_v2, %v447_v55  ;;  %3015 = vrot.lane.b32.xlu0 %v3014_v57, %s3440_s30  ;;  %v3068_v55 = vld [vmem:[#allocation4 + $0x10] sm:$0xff]  }
 0x1a8   :  { %v3847_v6 = vadd.f32 %v2925_v1, %v3756_v49  ;;  %v622_v8 = vmax.f32 %v3839_v62, 0.0 }
 0x1a9   :  { %v3850_v7 = vadd.f32 %v2926_v5, %v3756_v49  ;;  %v620_v12 = vmax.f32 %v3843_v3, 0.0  ;;  %v3072_v3 = vld [vmem:[#allocation4 + $0x50] sm:$0xff]  }
 0x1aa   :  { %v623_v9 = vmax.f32 %v3847_v6, 0.0 }
 0x1ab   :  { %v621_v13 = vmax.f32 %v3850_v7, 0.0  ;;  %v3071_v7 = vld [vmem:[#allocation4 + $0x48] sm:$0xff]  }
 0x1ac   :  { %v3024_v16 = vpack.i.bf16 %v623_v9, %v622_v8 }
 0x1ad   :  { %v3019_v18 = vpack.i.bf16 %v621_v13, %v620_v12 }
 0x1ae   :  { %3025 = vrot.lane.b32.xlu1 %v3024_v16, %s3440_s30 }
 0x1af   :  { %3020 = vrot.lane.b32.xlu0 %v3019_v18, %s3440_s30  ;;  %v3070_v18 = vld [vmem:[#allocation4 + $0x40] sm:$0xff]  }
 0x209   :  { %v2991_v49 = vpop.permute.xlu0 %2990 }
 0x20a   :  { %v2993_v21 = vunpack.i.h.bf16 %v2991_v49  ;;  %v2992_v22 = vunpack.i.l.bf16 %v2991_v49 }
 0x20c   :  { %v689_v25 = vmax.f32 %v609_v0, %v2993_v21  ;;  %v688_v26 = vmax.f32 %v608_v63, %v2992_v22  ;;  %v3074_v21 = vld [vmem:[#allocation6 + $0x20] sm:$0xff]   ;;  %v2516_v22 = vld [vmem:[%s4068_s4] ss:$0 sm:$0xff] }
 0x20d   :  { %v2996_v24 = vpop.permute.xlu0 %2995 }
 0x20e   :  { %v2998_v27 = vunpack.i.h.bf16 %v2996_v24  ;;  %v2997_v28 = vunpack.i.l.bf16 %v2996_v24  ;;  %v704_v38 = vmax.f32 %v688_v26, %v689_v25  ;;  %v3075_v24 = vld [vmem:[#allocation6 + $0x28] sm:$0xff]  }
 0x210   :  { %v691_v29 = vmax.f32 %v611_v4, %v2998_v27  ;;  %v690_v30 = vmax.f32 %v610_v11, %v2997_v28  ;;  %v3001_v33 = vpop.permute.xlu1 %3000  ;;  %v712_v49 = vpack.c.bf16 %v704_v38, %v3451_v58 }
 0x211   :  { %v3003_v34 = vunpack.i.h.bf16 %v3001_v33  ;;  %v3002_v36 = vunpack.i.l.bf16 %v3001_v33 }
 0x212   :  { %v705_v43 = vmax.f32 %v690_v30, %v691_v29  ;;  %v3076_v30 = vld [vmem:[#allocation6 + $0x30] sm:$0xff]  }
 0x213   :  { %v695_v56 = vmax.f32 %v615_v20, %v3003_v34  ;;  %v694_v63 = vmax.f32 %v614_v19, %v3002_v36 }
 0x214   :  { %v3006_v46 = vpop.permute.xlu1 %3005  ;;  %v724_v60 = vpack.c.bf16 %v705_v43, %v704_v38 }
 0x215   :  { %v3008_v0 = vunpack.i.h.bf16 %v3006_v46  ;;  %v3007_v59 = vunpack.i.l.bf16 %v3006_v46  ;;  %v707_v47 = vmax.f32 %v694_v63, %v695_v56  ;;  %v3077_v56 = vld [vmem:[#allocation6 + $0x38] sm:$0xff]  }
 0x216   :  { %2809 = vmatprep.mubr.msk.bf16.mxu1 %vm761_vm1, %v724_v60 }
 0x217   :  { %v693_v61 = vmax.f32 %v613_v23, %v3008_v0  ;;  %v692_v4 = vmax.f32 %v612_v31, %v3007_v59 }
 0x218   :  { %v3011_v11 = vpop.permute.xlu1 %3010 }
 0x219   :  { %v706_v48 = vmax.f32 %v692_v4, %v693_v61  ;;  %v3013_v50 = vunpack.i.h.bf16 %v3011_v11  ;;  %v3012_v51 = vunpack.i.l.bf16 %v3011_v11  ;;  %v3016_v14 = vpop.permute.xlu0 %3015 }
 0x21a   :  { %v3018_v20 = vunpack.i.h.bf16 %v3016_v14  ;;  %v3017_v52 = vunpack.i.l.bf16 %v3016_v14 }
 0x21b   :  { %v725_v10 = vpack.c.bf16 %v707_v47, %v706_v48  ;;  %v699_v19 = vmax.f32 %v619_v42, %v3013_v50  ;;  %v698_v53 = vmax.f32 %v618_v41, %v3012_v51  ;;  %v713_v62 = vpack.c.bf16 %v706_v48, %v705_v43  ;;  %v3078_v48 = vld [vmem:[#allocation6] sm:$0xff]  }
 0x21c   :  { %v697_v17 = vmax.f32 %v617_v45, %v3018_v20  ;;  %v696_v23 = vmax.f32 %v616_v44, %v3017_v52  ;;  %v3069_v44 = vld [vmem:[#allocation4 + $0x18] sm:$0xff]  }
 0x21d   :  { %v709_v31 = vmax.f32 %v698_v53, %v699_v19  ;;  %2810 = vmatmul.mubr.msk.bf16.vlgmr.msra.gmra.mrb[16].mxu1 %vm761_vm1, %v725_v10 }
 0x21e   :  { %v708_v54 = vmax.f32 %v696_v23, %v697_v17  ;;  %2818 = vmatpush3.bf16.msra.mxu1 %v3819_v39 }
 0x21f   :  { %2819 = vmatprep.subr.bf16.mxu1 %v3067_v15 }
 0x220   :  { %v3026_v37 = vpop.permute.xlu1 %3025  ;;  %v726_v42 = vpack.c.bf16 %v709_v31, %v708_v54 }
 0x221   :  { %v3028_v57 = vunpack.i.h.bf16 %v3026_v37  ;;  %v3027_v32 = vunpack.i.l.bf16 %v3026_v37  ;;  %v3021_v41 = vpop.permute.xlu0 %3020 }
 0x222   :  { %v3023_v1 = vunpack.i.h.bf16 %v3021_v41  ;;  %v3022_v2 = vunpack.i.l.bf16 %v3021_v41  ;;  %2813 = vmatprep.mubr.msk.bf16.mxu1 %vm761_vm1, %v726_v42  ;;  %2820 = vmatpush3.bf16.msra.mxu1 %v3067_v15 }
 0x223   :  { %v703_v35 = vmax.f32 %v623_v9, %v3028_v57  ;;  %v702_v40 = vmax.f32 %v622_v8, %v3027_v32  ;;  %2821 = vmatprep.subr.bf16.mxu1 %v3068_v55  ;;  %v714_v8 = vpack.c.bf16 %v708_v54, %v707_v47 }
 0x224   :  { %v701_v39 = vmax.f32 %v621_v13, %v3023_v1  ;;  %v700_v45 = vmax.f32 %v620_v12, %v3022_v2  ;;  %v3073_v12 = vld [vmem:[#allocation4 + $0x58] sm:$0xff]  }
 0x225   :  { %v711_v5 = vmax.f32 %v702_v40, %v703_v35 }
 0x226   :  { %v710_v6 = vmax.f32 %v700_v45, %v701_v39  ;;  %2822 = vmatpush3.bf16.msra.mxu1 %v3068_v55 }
 0x227   :  { %2823 = vmatprep.subr.bf16.mxu1 %v3069_v44  ;;  %v940_v13 = vpack.c.bf16 %v3451_v58, %v711_v5 }
 0x228   :  { %v727_v16 = vpack.c.bf16 %v711_v5, %v710_v6  ;;  %v715_v9 = vpack.c.bf16 %v710_v6, %v709_v31 }
 0x22a   :  { %2814 = vmatmul.mubr.msk.bf16.gmra.mrb[20].mxu1 %vm761_vm1, %v727_v16 }
 0x22b   :  { %2825 = vmatprep.mubr.msk.bf16.mxu1 %vm761_vm1, %v712_v49  ;;  %2824 = vmatpush3.bf16.msra.mxu1 %v3069_v44 }
 0x22c   :  { %2833 = vmatprep.subr.bf16.mxu1 %v3070_v18 }
 0x232   :  { %2826 = vmatmul.mubr.msk.bf16.vlgmr.msra.gmra.mrb[16].mxu1 %vm761_vm1, %v713_v62 }
 0x233   :  { %2829 = vmatprep.mubr.msk.bf16.mxu1 %vm761_vm1, %v714_v8  ;;  %2834 = vmatpush3.bf16.msra.mxu1 %v3070_v18 }
 0x234   :  { %2835 = vmatprep.subr.bf16.mxu1 %v3071_v7 }
 0x237   :  { %2836 = vmatpush3.bf16.msra.mxu1 %v3071_v7 }
 0x238   :  { %2837 = vmatprep.subr.bf16.mxu1 %v3072_v3 }
 0x23a   :  { %2830 = vmatmul.mubr.msk.bf16.gmra.mrb[20].mxu1 %vm761_vm1, %v715_v9 }
 0x23b   :  { %2838 = vmatpush3.bf16.msra.mxu1 %v3072_v3  ;;  %2841 = vmatprep.mubr.msk.bf16.mxu1 %vm761_vm1, %v713_v62 }
 0x23c   :  { %2839 = vmatprep.subr.bf16.mxu1 %v3073_v12 }
 0x23f   :  { %2840 = vmatpush3.bf16.msra.mxu1 %v3073_v12 }
 0x240   :  { %2849 = vmatprep.subr.bf16.mxu1 %v3074_v21 }
 0x242   :  { %2842 = vmatmul.mubr.msk.bf16.vlgmr.msra.gmra.mrb[16].mxu1 %vm761_vm1, %v714_v8 }
 0x243   :  { %2845 = vmatprep.mubr.msk.bf16.mxu1 %vm761_vm1, %v715_v9  ;;  %2850 = vmatpush3.bf16.msra.mxu1 %v3074_v21  ;;  %v3079_v9 = vld [vmem:[#allocation6 + $0x8] sm:$0xff]   ;;  %v3081_v21 = vld [vmem:[#allocation6 + $0x18] sm:$0xff]  }
 0x244   :  { %2851 = vmatprep.subr.bf16.mxu1 %v3075_v24 }
 0x247   :  { %2852 = vmatpush3.bf16.msra.mxu1 %v3075_v24 }
 0x248   :  { %2853 = vmatprep.subr.bf16.mxu1 %v3076_v30 }
 0x24a   :  { %2846 = vmatmul.mubr.msk.bf16.gmra.mrb[20].mxu1 %vm761_vm1, %v940_v13  ;;  %v3080_v13 = vld [vmem:[#allocation6 + $0x10] sm:$0xff]  }
 0x24b   :  { %2854 = vmatpush3.bf16.msra.mxu1 %v3076_v30  ;;  %v3089_v30 = vld [vmem:[#allocation7] sm:$0xff]  }
 0x24c   :  { %2855 = vmatprep.subr.bf16.mxu1 %v3077_v56 }
 0x24f   :  { %2856 = vmatpush3.bf16.msra.mxu1 %v3077_v56  ;;  %v3093_v56 = vld [vmem:[#allocation7 + $0x18] sm:$0xff]  }
 0x250   :  { %2861 = vmatprep.subr.bf16.mxu1 %v3078_v48 }
 0x315   :  { %v2843_v25 = vpop.f32.mrb[16].mxu1 }
 0x316   :  { %v1059_v26 = vadd.f32 %v2843_v25, %v2516_v22  ;;  %v1011_v27 = vpop.f32.mrb[17].mxu1  ;;  %v3083_v25 = vld [vmem:[#allocation6 + $0x48] sm:$0xff]  }
 0x317   :  { %v1057_v28 = vadd.f32 %v2516_v22, %v1011_v27  ;;  %v2844_v29 = vpop.f32.mrb[18].mxu1  ;;  %v3085_v27 = vld [vmem:[#allocation6 + $0x58] sm:$0xff]  }
 0x318   :  { %v1060_v33 = vadd.f32 %v2844_v29, %v2516_v22  ;;  %v1014_v34 = vpop.f32.mrb[19].mxu1  ;;  %v1067_v38 = vmax.f32 %v1059_v26, 0.0  ;;  %v3084_v26 = vld [vmem:[#allocation6 + $0x50] sm:$0xff]   ;;  %v3086_v29 = vld [vmem:[#allocation7 + $0x20] sm:$0xff]  }
 0x319   :  { %v1058_v36 = vadd.f32 %v2516_v22, %v1014_v34  ;;  %v1065_v46 = vmax.f32 %v1057_v28, 0.0  ;;  %2886 = vmatpush3.bf16.msra.mxu0 %v3086_v29  ;;  %v3090_v34 = vld [vmem:[#allocation7 + $0x8] sm:$0xff]  }
 0x31a   :  { %v1068_v43 = vmax.f32 %v1060_v33, 0.0  ;;  %v3087_v33 = vld [vmem:[#allocation7 + $0x28] sm:$0xff]   ;;  %2887 = vmatprep.subr.bf16.mxu0 %v3451_v58 }
 0x31b   :  { %v1066_v60 = vmax.f32 %v1058_v36, 0.0  ;;  %v3088_v36 = vld [vmem:[#allocation7 + $0x30] sm:$0xff]  }
 0x31c   :  { %v3029_v63 = vpack.i.bf16 %v1068_v43, %v1067_v38 }
 0x31d   :  { %v2847_v0 = vpop.f32.mrb[20].mxu1  ;;  %v3034_v59 = vpack.i.bf16 %v1066_v60, %v1065_v46  ;;  %2888 = vmatpush3.bf16.msra.mxu0 %v3087_v33 }
 0x31e   :  { %v1063_v61 = vadd.f32 %v2847_v0, %v2516_v22  ;;  %3030 = vrot.lane.b32.xlu1 %v3029_v63, %s3440_s30  ;;  %v1027_v4 = vpop.f32.mrb[21].mxu1  ;;  %2889 = vmatprep.subr.bf16.mxu0 %v3451_v58 }
 0x31f   :  { %v1061_v11 = vadd.f32 %v2516_v22, %v1027_v4  ;;  %3035 = vrot.lane.b32.xlu0 %v3034_v59, %s3440_s30  ;;  %v2848_v47 = vpop.f32.mrb[22].mxu1 }
 0x320   :  { %v1064_v50 = vadd.f32 %v2848_v47, %v2516_v22  ;;  %v1030_v51 = vpop.f32.mrb[23].mxu1  ;;  %v1071_v20 = vmax.f32 %v1063_v61, 0.0 }
 0x321   :  { %v1062_v14 = vadd.f32 %v2516_v22, %v1030_v51  ;;  %v1069_v10 = vmax.f32 %v1061_v11, 0.0  ;;  %v3082_v22 = vld [vmem:[#allocation6 + $0x40] sm:$0xff]   ;;  %2890 = vmatpush3.bf16.msra.mxu0 %v3088_v36  ;;  %v3096_v51 = vld [vmem:[%s4073_s9 + $0x4] ss:$16 sps:$4 sm:$0xff]  }
 0x322   :  { %v1072_v52 = vmax.f32 %v1064_v50, 0.0  ;;  %2891 = vmatprep.subr.bf16.mxu0 %v3451_v58 }
 0x323   :  { %v1070_v19 = vmax.f32 %v1062_v14, 0.0 }
 0x324   :  { %v3044_v53 = vpack.i.bf16 %v1072_v52, %v1071_v20 }
 0x325   :  { %v3039_v15 = vpack.i.bf16 %v1070_v19, %v1069_v10 }
 0x326   :  { %3045 = vrot.lane.b32.xlu1 %v3044_v53, %s3440_s30 }
 0x327   :  { %3040 = vrot.lane.b32.xlu0 %v3039_v15, %s3440_s30 }
 0x390   :  { %v3031_v17 = vpop.permute.xlu1 %3030 }
 0x391   :  { %v3033_v23 = vunpack.i.h.bf16 %v3031_v17  ;;  %v3032_v31 = vunpack.i.l.bf16 %v3031_v17  ;;  %v3036_v54 = vpop.permute.xlu0 %3035 }
 0x392   :  { %v3038_v55 = vunpack.i.h.bf16 %v3036_v54  ;;  %v3037_v37 = vunpack.i.l.bf16 %v3036_v54 }
 0x393   :  { %v1108_v42 = vmax.f32 %v1068_v43, %v3033_v23  ;;  %v1107_v57 = vmax.f32 %v1067_v38, %v3032_v31  ;;  %v3092_v38 = vld [vmem:[#allocation7 + $0x10] sm:$0xff]   ;;  %v2535_v43 = vld [vmem:[%s4070_s6] ss:$0 sm:$0xff] }
 0x394   :  { %v1106_v32 = vmax.f32 %v1066_v60, %v3038_v55  ;;  %v1105_v41 = vmax.f32 %v1065_v46, %v3037_v37  ;;  %v3091_v46 = vld [vmem:[#allocation7 + $0x38] sm:$0xff]  }
 0x395   :  { %v1114_v1 = vmax.f32 %v1107_v57, %v1108_v42  ;;  %2892 = vmatpush3.bf16.msra.mxu0 %v3091_v46  ;;  %v3126_v46 = vld [vmem:[#allocation12 + $0x24] ss:$8 sps:$4 sm:$0xff]  }
 0x396   :  { %v1113_v2 = vmax.f32 %v1105_v41, %v1106_v32  ;;  %1707 = vmatprep.subr.bf16.mxu0 %v3096_v51  ;;  %v3094_v41 = vld [vmem:[%s4073_s9] ss:$16 sps:$4 sm:$0xff]  }
 0x397   :  { %v3144_v51 = vld [vmem:[#allocation12 + $0x84] ss:$8 sps:$4 sm:$0xff]  }
 0x398   :  { %v3046_v35 = vpop.permute.xlu1 %3045  ;;  %v1127_v40 = vpack.c.bf16 %v1114_v1, %v1113_v2  ;;  %v1117_v12 = vpack.c.bf16 %v1113_v2, %v3451_v58  ;;  %v3097_v2 = vld [vmem:[%s4073_s9 + $0x8] ss:$16 sps:$4 sm:$0xff]  }
 0x399   :  { %v3048_v44 = vunpack.i.h.bf16 %v3046_v35  ;;  %v3047_v39 = vunpack.i.l.bf16 %v3046_v35  ;;  %v3041_v45 = vpop.permute.xlu0 %3040  ;;  %v3102_v35 = vld [vmem:[%s4073_s9 + $0x24] ss:$16 sps:$4 sm:$0xff]  }
 0x39a   :  { %v3043_v5 = vunpack.i.h.bf16 %v3041_v45  ;;  %v3042_v6 = vunpack.i.l.bf16 %v3041_v45  ;;  %2857 = vmatprep.mubr.msk.bf16.mxu1 %vm761_vm1, %v1127_v40  ;;  %v3103_v45 = vld [vmem:[%s4073_s9 + $0x28] ss:$16 sps:$4 sm:$0xff]  }
 0x39b   :  { %v1112_v16 = vmax.f32 %v1072_v52, %v3048_v44  ;;  %v1111_v18 = vmax.f32 %v1071_v20, %v3047_v39  ;;  %v3099_v52 = vld [vmem:[%s4073_s9 + $0xc] ss:$16 sps:$4 sm:$0xff]   ;;  %v3100_v39 = vld [vmem:[%s4073_s9 + $0x20] ss:$16 sps:$4 sm:$0xff]  }
 0x39c   :  { %v1110_v49 = vmax.f32 %v1070_v19, %v3043_v5  ;;  %v1109_v62 = vmax.f32 %v1069_v10, %v3042_v6  ;;  %v3105_v44 = vld [vmem:[%s4073_s9 + $0x2c] ss:$16 sps:$4 sm:$0xff]   ;;  %v3108_v5 = vld [vmem:[%s4073_s9 + $0x44] ss:$16 sps:$4 sm:$0xff]  }
 0x39d   :  { %v1116_v7 = vmax.f32 %v1111_v18, %v1112_v16  ;;  %v3111_v6 = vld [vmem:[%s4073_s9 + $0x4c] ss:$16 sps:$4 sm:$0xff]   ;;  %v3106_v16 = vld [vmem:[%s4073_s9 + $0x40] ss:$16 sps:$4 sm:$0xff]   ;;  %v3109_v18 = vld [vmem:[%s4073_s9 + $0x48] ss:$16 sps:$4 sm:$0xff]  }
 0x39e   :  { %v1115_v8 = vmax.f32 %v1109_v62, %v1110_v49  ;;  %v3114_v49 = vld [vmem:[%s4073_s9 + $0x64] ss:$16 sps:$4 sm:$0xff]   ;;  %v3117_v62 = vld [vmem:[%s4073_s9 + $0x6c] ss:$16 sps:$4 sm:$0xff]  }
 0x39f   :  { %v1296_v28 = vpack.c.bf16 %v3451_v58, %v1116_v7 }
 0x3a0   :  { %v1128_v3 = vpack.c.bf16 %v1116_v7, %v1115_v8  ;;  %v1118_v24 = vpack.c.bf16 %v1115_v8, %v1114_v1  ;;  %v3112_v7 = vld [vmem:[%s4073_s9 + $0x60] ss:$16 sps:$4 sm:$0xff]   ;;  %v3115_v8 = vld [vmem:[%s4073_s9 + $0x68] ss:$16 sps:$4 sm:$0xff]  }
 0x3a2   :  { %2858 = vmatmul.mubr.msk.bf16.vlgmr.msra.gmra.mrb[24].mxu1 %vm761_vm1, %v1128_v3  ;;  %v3453_v3 = vmov 0  }
 0x3a3   :  { %2862 = vmatpush3.bf16.msra.mxu1 %v3078_v48  ;;  %2869 = vmatprep.mubr.msk.bf16.mxu1 %vm761_vm1, %v1117_v12 }
 0x3a4   :  { %2863 = vmatprep.subr.bf16.mxu1 %v3079_v9 }
 0x3a7   :  { %2864 = vmatpush3.bf16.msra.mxu1 %v3079_v9  ;;  %v3120_v9 = vld [vmem:[#allocation12 + $0x4] ss:$8 sps:$4 sm:$0xff]  }
 0x3a8   :  { %2865 = vmatprep.subr.bf16.mxu1 %v3080_v13 }
 0x3ab   :  { %2866 = vmatpush3.bf16.msra.mxu1 %v3080_v13 }
 0x3ac   :  { %2867 = vmatprep.subr.bf16.mxu1 %v3081_v21 }
 0x3af   :  { %2868 = vmatpush3.bf16.msra.mxu1 %v3081_v21 }
 0x3b0   :  { %2873 = vmatprep.subr.bf16.mxu1 %v3082_v22 }
 0x3b2   :  { %2870 = vmatmul.mubr.msk.bf16.vlgmr.msra.gmra.mrb[24].mxu1 %vm761_vm1, %v1118_v24 }
 0x3b3   :  { %2874 = vmatpush3.bf16.msra.mxu1 %v3082_v22  ;;  %2881 = vmatprep.mubr.msk.bf16.mxu1 %vm761_vm1, %v1118_v24  ;;  %v2546_v22 = vld [vmem:[#allocation9] ss:$0 sm:$0xff] }
 0x3b4   :  { %2875 = vmatprep.subr.bf16.mxu1 %v3083_v25 }
 0x3b7   :  { %2876 = vmatpush3.bf16.msra.mxu1 %v3083_v25 }
 0x3b8   :  { %2877 = vmatprep.subr.bf16.mxu1 %v3084_v26 }
 0x3bb   :  { %2878 = vmatpush3.bf16.msra.mxu1 %v3084_v26 }
 0x3bc   :  { %2879 = vmatprep.subr.bf16.mxu1 %v3085_v27 }
 0x3bf   :  { %2880 = vmatpush3.bf16.msra.mxu1 %v3085_v27 }
 0x3c0   :  { %2897 = vmatprep.subr.bf16.mxu1 %v3451_v58 }
 0x3c2   :  { %2882 = vmatmul.mubr.msk.bf16.vlgmr.msra.gmra.mrb[24].mxu1 %vm761_vm1, %v1296_v28 }
 0x3c3   :  { %2898 = vmatpush3.bf16.msra.mxu1 %v3089_v30  ;;  %2905 = vmatprep.mubr.msk.bf16.mxu1 %vm3452_vm2, %v3451_v58 }
 0x3c4   :  { %2899 = vmatprep.subr.bf16.mxu1 %v3451_v58 }
 0x3c7   :  { %2900 = vmatpush3.bf16.msra.mxu1 %v3090_v34  ;;  %v3118_v34 = vld [vmem:[#allocation12] ss:$8 sps:$4 sm:$0xff]  }
 0x3c8   :  { %2901 = vmatprep.subr.bf16.mxu1 %v3451_v58 }
 0x3cb   :  { %2902 = vmatpush3.bf16.msra.mxu1 %v3092_v38  ;;  %v3123_v38 = vld [vmem:[#allocation12 + $0x14] ss:$8 sps:$4 sm:$0xff]  }
 0x3cc   :  { %2903 = vmatprep.subr.bf16.mxu1 %v3451_v58 }
 0x3cf   :  { %2904 = vmatpush3.bf16.msra.mxu1 %v3093_v56  ;;  %v3129_v56 = vld [vmem:[#allocation12 + $0x34] ss:$8 sps:$4 sm:$0xff]  }
 0x3d0   :  { %1748 = vmatprep.subr.bf16.mxu1 %v3099_v52  ;;  %v3145_v52 = vld [vmem:[#allocation12 + $0x90] ss:$8 sps:$4 sm:$0xff]  }
 0x495   :  { %v2883_v60 = vpop.f32.mrb[24].mxu1 }
 0x496   :  { %v1395_v63 = vadd.f32 %v2883_v60, %v2535_v43  ;;  %v1367_v0 = vpop.f32.mrb[25].mxu1  ;;  %v3124_v60 = vld [vmem:[#allocation12 + $0x20] ss:$8 sps:$4 sm:$0xff]  }
 0x497   :  { %v1393_v59 = vadd.f32 %v2535_v43, %v1367_v0  ;;  %v2884_v61 = vpop.f32.mrb[26].mxu1  ;;  %v3132_v0 = vld [vmem:[#allocation12 + $0x44] ss:$8 sps:$4 sm:$0xff]  }
 0x498   :  { %v1396_v4 = vadd.f32 %v2884_v61, %v2535_v43  ;;  %v1370_v11 = vpop.f32.mrb[27].mxu1  ;;  %v1399_v48 = vmax.f32 %v1395_v63, 0.0  ;;  %v3127_v63 = vld [vmem:[#allocation12 + $0x30] ss:$8 sps:$4 sm:$0xff]   ;;  %v3135_v61 = vld [vmem:[#allocation12 + $0x54] ss:$8 sps:$4 sm:$0xff]  }
 0x499   :  { %v1394_v47 = vadd.f32 %v2535_v43, %v1370_v11  ;;  %v1397_v14 = vmax.f32 %v1393_v59, 0.0  ;;  %v3121_v43 = vld [vmem:[#allocation12 + $0x10] ss:$8 sps:$4 sm:$0xff]   ;;  %v3130_v59 = vld [vmem:[#allocation12 + $0x40] ss:$8 sps:$4 sm:$0xff]  }
 0x49a   :  { %v1400_v50 = vmax.f32 %v1396_v4, 0.0  ;;  %v3133_v4 = vld [vmem:[#allocation12 + $0x50] ss:$8 sps:$4 sm:$0xff]   ;;  %v3138_v11 = vld [vmem:[#allocation12 + $0x64] ss:$8 sps:$4 sm:$0xff]  }
 0x49b   :  { %v1398_v20 = vmax.f32 %v1394_v47, 0.0  ;;  %v3136_v47 = vld [vmem:[#allocation12 + $0x60] ss:$8 sps:$4 sm:$0xff]  }
 0x49c   :  { %v3054_v10 = vpack.i.bf16 %v1400_v50, %v1399_v48 }
 0x49d   :  { %v3049_v19 = vpack.i.bf16 %v1398_v20, %v1397_v14 }
 0x49e   :  { %3055 = vrot.lane.b32.xlu1 %v3054_v10, %s3440_s30  ;;  %v3150_v10 = vld [vmem:[#allocation12 + $0xa4] ss:$8 sps:$4 sm:$0xff]  }
 0x49f   :  { %3050 = vrot.lane.b32.xlu0 %v3049_v19, %s3440_s30  ;;  %v3148_v19 = vld [vmem:[#allocation12 + $0xa0] ss:$8 sps:$4 sm:$0xff]  }
 0x510   :  { %v3056_v58 = vpop.permute.xlu1 %3055 }
 0x511   :  { %v3058_v53 = vunpack.i.h.bf16 %v3056_v58  ;;  %v3057_v15 = vunpack.i.l.bf16 %v3056_v58  ;;  %v3051_v17 = vpop.permute.xlu0 %3050  ;;  %v3153_v58 = vld [vmem:[#allocation12 + $0xb4] ss:$8 sps:$4 sm:$0xff]  }
 0x512   :  { %v3053_v23 = vunpack.i.h.bf16 %v3051_v17  ;;  %v3052_v31 = vunpack.i.l.bf16 %v3051_v17  ;;  %v3154_v17 = vld [vmem:[#allocation12 + $0xc0] ss:$8 sps:$4 sm:$0xff]  }
 0x513   :  { %v1420_v54 = vmax.f32 %v1400_v50, %v3058_v53  ;;  %v1419_v55 = vmax.f32 %v1399_v48, %v3057_v15  ;;  %v3141_v48 = vld [vmem:[#allocation12 + $0x74] ss:$8 sps:$4 sm:$0xff]   ;;  %v3139_v50 = vld [vmem:[#allocation12 + $0x70] ss:$8 sps:$4 sm:$0xff]   ;;  %v3156_v15 = vld [vmem:[#allocation12 + $0xc4] ss:$8 sps:$4 sm:$0xff]  }
 0x514   :  { %v1418_v37 = vmax.f32 %v1398_v20, %v3053_v23  ;;  %v1417_v42 = vmax.f32 %v1397_v14, %v3052_v31  ;;  %v3142_v14 = vld [vmem:[#allocation12 + $0x80] ss:$8 sps:$4 sm:$0xff]   ;;  %v3147_v20 = vld [vmem:[#allocation12 + $0x94] ss:$8 sps:$4 sm:$0xff]   ;;  %v3151_v53 = vld [vmem:[#allocation12 + $0xb0] ss:$8 sps:$4 sm:$0xff]  }
 0x515   :  { %v1422_v57 = vmax.f32 %v1419_v55, %v1420_v54  ;;  %v3159_v23 = vld [vmem:[#allocation12 + $0xd4] ss:$8 sps:$4 sm:$0xff]   ;;  %v3157_v31 = vld [vmem:[#allocation12 + $0xd0] ss:$8 sps:$4 sm:$0xff]   ;;  %v3162_v54 = vld [vmem:[#allocation12 + $0xe4] ss:$8 sps:$4 sm:$0xff]  }
 0x516   :  { %v1421_v32 = vmax.f32 %v1417_v42, %v1418_v37  ;;  %v3160_v55 = vld [vmem:[#allocation12 + $0xe0] ss:$8 sps:$4 sm:$0xff]   ;;  %v3165_v37 = vld [vmem:[#allocation12 + $0xf4] ss:$8 sps:$4 sm:$0xff]   ;;  %v3163_v42 = vld [vmem:[#allocation12 + $0xf0] ss:$8 sps:$4 sm:$0xff]  }
 0x517   :  { %v1432_v1 = vpack.c.bf16 %v1422_v57, %v1422_v57  ;;  %v3168_v57 = vld [vmem:[#allocation12 + $0x104] ss:$8 sps:$4 sm:$0xff]  }
 0x518   :  { %v1423_v40 = vpack.c.bf16 %v1421_v32, %v1421_v32  ;;  %v3214_v32 = vld [vmem:[%s4077_s13 + $0x40] sm:$0xff]  }
 0x519   :  { %2894 = vmatmul.mubr.msk.bf16.vlgmr.msra.gmra.mrb[16].mxu0 %vm761_vm1, %v1432_v1  ;;  %v3216_v1 = vld [vmem:[%s4077_s13 + $0x48] sm:$0xff]  }
 0x51a   :  { %2906 = vmatmul.mubr.msk.bf16.vlgmr.msra.gmra.mrb[28].mxu1 %vm761_vm1, %v1423_v40  ;;  %1708 = vmatpush1.bf16.msra.mxu0 %v3094_v41  ;;  %v3215_v41 = vld [vmem:[%s4077_s13] sm:$0xff]   ;;  %v3219_v40 = vld [vmem:[%s4077_s13 + $0x10] sm:$0xff]  }
 0x51b   :  { %1749 = vmatpush1.bf16.msra.mxu1 %v3097_v2  ;;  %1709 = vmatprep.subr.bf16.mxu0 %v3102_v35  ;;  %v3217_v2 = vld [vmem:[%s4077_s13 + $0x8] sm:$0xff]   ;;  %v3218_v35 = vld [vmem:[%s4077_s13 + $0x50] sm:$0xff]  }
 0x51c   :  { %1750 = vmatprep.subr.bf16.mxu1 %v3105_v44  ;;  %1739 = vmatprep.mubr.bf16.mxu0 %v3453_v3  ;;  %v3220_v44 = vld [vmem:[%s4077_s13 + $0x58] sm:$0xff]  }
 0x51d   :  { %1780 = vmatprep.mubr.bf16.mxu1 %v3453_v3 }
 0x51e   :  { %1710 = vmatpush1.bf16.msra.mxu0 %v3100_v39  ;;  %v3221_v39 = vld [vmem:[%s4077_s13 + $0x18] sm:$0xff]  }
 0x51f   :  { %1751 = vmatpush1.bf16.msra.mxu1 %v3103_v45  ;;  %1711 = vmatprep.subr.bf16.mxu0 %v3108_v5  ;;  %v3222_v45 = vld [vmem:[%s4077_s13 + $0x60] sm:$0xff]  }
 0x520   :  { %1752 = vmatprep.subr.bf16.mxu1 %v3111_v6  ;;  %v3223_v5 = vld [vmem:[%s4077_s13 + $0x20] sm:$0xff]   ;;  %v3224_v6 = vld [vmem:[%s4077_s13 + $0x68] sm:$0xff]  }
 0x522   :  { %1712 = vmatpush1.bf16.msra.mxu0 %v3106_v16  ;;  %v3225_v16 = vld [vmem:[%s4077_s13 + $0x28] sm:$0xff]  }
 0x523   :  { %1753 = vmatpush1.bf16.msra.mxu1 %v3109_v18  ;;  %1713 = vmatprep.subr.bf16.mxu0 %v3114_v49  ;;  %v1604_v18 = vlaneseq }
 0x524   :  { %1754 = vmatprep.subr.bf16.mxu1 %v3117_v62 }
 0x525   :  { %v4026_v49 = vshrl.u32 %v1604_v18, 7  ;;  %v3228_v18 = vld [vmem:[%s4077_s13 + $0x78] sm:$0xff]  }
 0x526   :  { %1714 = vmatpush1.bf16.msra.mxu0 %v3112_v7  ;;  %v4029_v7 = vld [vmem:[#allocation10] sm:$0xf] }
 0x527   :  { %1755 = vmatpush1.bf16.msra.mxu1 %v3115_v8  ;;  %2193 = vmatprep.subr.bf16.mxu0 %v3120_v9  ;;  %v1606_v62 = vsub.s32 0, %v4026_v49  ;;  %v1610_v8 = vsub.s32 1, %v4026_v49  ;;  %v1618_v3 = vsub.s32 3, %v4026_v49 }
 0x528   :  { %2725 = vmatprep.subr.bf16.mxu1 %v3214_v32  ;;  %v3207_v32 = vld [vmem:[#allocation12 + $0x1d4] ss:$8 sps:$4 sm:$0xff]  }
 0x529   :  { %v1607_v9 = vrot.slane %v4029_v7, %v1606_v62 }
 0x5ec   :  { %v1503_v12 = vpop.f32.mrb[16].mxu0 }
 0x5ed   :  { %v2895_v13 = vpop.f32.mrb[17].mxu0  ;;  %v1570_v21 = vpop.f32.mrb[28].mxu1 }
 0x5ee   :  { %v1571_v24 = vadd.f32 %v1570_v21, %v1503_v12  ;;  %v1506_v25 = vpop.f32.mrb[18].mxu0  ;;  %v2907_v26 = vpop.f32.mrb[29].mxu1  ;;  %v1611_v12 = vrot.slane %v4029_v7, %v1610_v8  ;;  %v1619_v13 = vrot.slane %v4029_v7, %v1618_v3  ;;  %v1861_v3 = vld [vmem:[#allocation13] sm:$0x3] }
 0x5ef   :  { %v2896_v27 = vpop.f32.mrb[19].mxu0  ;;  %v1573_v28 = vpop.f32.mrb[30].mxu1 }
 0x5f0   :  { %v1583_v29 = vadd.f32 %v2546_v22, %v1571_v24  ;;  %v2908_v30 = vpop.f32.mrb[31].mxu1 }
 0x5f2   :  { %v1584_v33 = vmax.f32 %v1583_v29, 0.0 }
 0x5f4   :  { %v1585_v36 = vpack.c.bf16 %v1584_v33, %v1584_v33 }
 0x5f6   :  { %2563 = vmatmul.mubr.msk.bf16.vlgmr.msra.gmra.mrb[20].mxu0 %vm761_vm1, %v1585_v36  ;;  %2564 = vmatmul.mubr.msk.bf16.vlgmr.msra.gmra.mrb[32].mxu1 %vm761_vm1, %v1585_v36 }
 0x5f7   :  { %2194 = vmatpush1.bf16.msra.mxu0 %v3118_v34  ;;  %2726 = vmatpush3.bf16.msra.mxu1 %v3215_v41  ;;  %v3205_v41 = vld [vmem:[#allocation12 + $0x1d0] ss:$8 sps:$4 sm:$0xff]  }
 0x5f8   :  { %2195 = vmatprep.subr.bf16.mxu0 %v3123_v38  ;;  %2727 = vmatprep.subr.bf16.mxu1 %v3216_v1 }
 0x5fb   :  { %2196 = vmatpush1.bf16.msra.mxu0 %v3121_v43  ;;  %2728 = vmatpush3.bf16.msra.mxu1 %v3217_v2  ;;  %v3210_v2 = vld [vmem:[#allocation12 + $0x1e4] ss:$8 sps:$4 sm:$0xff]  }
 0x5fc   :  { %2197 = vmatprep.subr.bf16.mxu0 %v3126_v46  ;;  %2729 = vmatprep.subr.bf16.mxu1 %v3218_v35  ;;  %v3208_v35 = vld [vmem:[#allocation12 + $0x1e0] ss:$8 sps:$4 sm:$0xff]  }
 0x5ff   :  { %2198 = vmatpush1.bf16.msra.mxu0 %v3124_v60  ;;  %2730 = vmatpush3.bf16.msra.mxu1 %v3219_v40  ;;  %v3166_v60 = vld [vmem:[#allocation12 + $0x100] ss:$8 sps:$4 sm:$0xff]  }
 0x600   :  { %2199 = vmatprep.subr.bf16.mxu0 %v3129_v56  ;;  %2731 = vmatprep.subr.bf16.mxu1 %v3220_v44  ;;  %v3213_v44 = vld [vmem:[#allocation12 + $0x1f4] ss:$8 sps:$4 sm:$0xff]  }
 0x603   :  { %2200 = vmatpush1.bf16.msra.mxu0 %v3127_v63  ;;  %2732 = vmatpush3.bf16.msra.mxu1 %v3221_v39  ;;  %v3171_v63 = vld [vmem:[#allocation12 + $0x114] ss:$8 sps:$4 sm:$0xff]   ;;  %v3211_v39 = vld [vmem:[#allocation12 + $0x1f0] ss:$8 sps:$4 sm:$0xff]  }
 0x604   :  { %2201 = vmatprep.subr.bf16.mxu0 %v3132_v0  ;;  %2733 = vmatprep.subr.bf16.mxu1 %v3222_v45 }
 0x607   :  { %2202 = vmatpush1.bf16.msra.mxu0 %v3130_v59  ;;  %2734 = vmatpush3.bf16.msra.mxu1 %v3223_v5  ;;  %v3169_v59 = vld [vmem:[#allocation12 + $0x110] ss:$8 sps:$4 sm:$0xff]  }
 0x608   :  { %2203 = vmatprep.subr.bf16.mxu0 %v3135_v61  ;;  %2735 = vmatprep.subr.bf16.mxu1 %v3224_v6  ;;  %v3174_v61 = vld [vmem:[#allocation12 + $0x124] ss:$8 sps:$4 sm:$0xff]   ;;  %v3226_v6 = vld [vmem:[%s4077_s13 + $0x70] sm:$0xff]  }
 0x60b   :  { %2204 = vmatpush1.bf16.msra.mxu0 %v3133_v4  ;;  %2736 = vmatpush3.bf16.msra.mxu1 %v3225_v16  ;;  %v3172_v4 = vld [vmem:[#allocation12 + $0x120] ss:$8 sps:$4 sm:$0xff]   ;;  %v3227_v16 = vld [vmem:[%s4077_s13 + $0x30] sm:$0xff]  }
 0x60c   :  { %2205 = vmatprep.subr.bf16.mxu0 %v3138_v11  ;;  %v3177_v11 = vld [vmem:[#allocation12 + $0x134] ss:$8 sps:$4 sm:$0xff]   ;;  %2737 = vmatprep.subr.bf16.mxu1 %v3226_v6 }
 0x60f   :  { %2206 = vmatpush1.bf16.msra.mxu0 %v3136_v47  ;;  %v3175_v47 = vld [vmem:[#allocation12 + $0x130] ss:$8 sps:$4 sm:$0xff]   ;;  %2738 = vmatpush3.bf16.msra.mxu1 %v3227_v16 }
 0x610   :  { %2207 = vmatprep.subr.bf16.mxu0 %v3141_v48  ;;  %v3180_v48 = vld [vmem:[#allocation12 + $0x144] ss:$8 sps:$4 sm:$0xff]   ;;  %2739 = vmatprep.subr.bf16.mxu1 %v3228_v18 }
 0x613   :  { %2208 = vmatpush1.bf16.msra.mxu0 %v3139_v50  ;;  %v3178_v50 = vld [vmem:[#allocation12 + $0x140] ss:$8 sps:$4 sm:$0xff]  }
 0x614   :  { %2209 = vmatprep.subr.bf16.mxu0 %v3144_v51  ;;  %v3183_v51 = vld [vmem:[#allocation12 + $0x154] ss:$8 sps:$4 sm:$0xff]  }
 0x617   :  { %2210 = vmatpush1.bf16.msra.mxu0 %v3142_v14  ;;  %v3181_v14 = vld [vmem:[#allocation12 + $0x150] ss:$8 sps:$4 sm:$0xff]  }
 0x618   :  { %2211 = vmatprep.subr.bf16.mxu0 %v3147_v20  ;;  %v3186_v20 = vld [vmem:[#allocation12 + $0x164] ss:$8 sps:$4 sm:$0xff]  }
 0x61b   :  { %2212 = vmatpush1.bf16.msra.mxu0 %v3145_v52  ;;  %v3184_v52 = vld [vmem:[#allocation12 + $0x160] ss:$8 sps:$4 sm:$0xff]  }
 0x61c   :  { %2213 = vmatprep.subr.bf16.mxu0 %v3150_v10  ;;  %v3189_v10 = vld [vmem:[#allocation12 + $0x174] ss:$8 sps:$4 sm:$0xff]  }
 0x61f   :  { %2214 = vmatpush1.bf16.msra.mxu0 %v3148_v19  ;;  %v3187_v19 = vld [vmem:[#allocation12 + $0x170] ss:$8 sps:$4 sm:$0xff]  }
 0x620   :  { %2215 = vmatprep.subr.bf16.mxu0 %v3153_v58  ;;  %v3192_v58 = vld [vmem:[#allocation12 + $0x184] ss:$8 sps:$4 sm:$0xff]  }
 0x623   :  { %2216 = vmatpush1.bf16.msra.mxu0 %v3151_v53  ;;  %v3190_v53 = vld [vmem:[#allocation12 + $0x180] ss:$8 sps:$4 sm:$0xff]  }
 0x624   :  { %2217 = vmatprep.subr.bf16.mxu0 %v3156_v15  ;;  %v3195_v15 = vld [vmem:[#allocation12 + $0x194] ss:$8 sps:$4 sm:$0xff]  }
 0x627   :  { %2218 = vmatpush1.bf16.msra.mxu0 %v3154_v17  ;;  %v3193_v17 = vld [vmem:[#allocation12 + $0x190] ss:$8 sps:$4 sm:$0xff]  }
 0x628   :  { %2219 = vmatprep.subr.bf16.mxu0 %v3159_v23  ;;  %v3198_v23 = vld [vmem:[#allocation12 + $0x1a4] ss:$8 sps:$4 sm:$0xff]  }
 0x62b   :  { %2220 = vmatpush1.bf16.msra.mxu0 %v3157_v31  ;;  %v3196_v31 = vld [vmem:[#allocation12 + $0x1a0] ss:$8 sps:$4 sm:$0xff]  }
 0x62c   :  { %2221 = vmatprep.subr.bf16.mxu0 %v3162_v54  ;;  %v3201_v54 = vld [vmem:[#allocation12 + $0x1b4] ss:$8 sps:$4 sm:$0xff]  }
 0x62f   :  { %2222 = vmatpush1.bf16.msra.mxu0 %v3160_v55  ;;  %v3199_v55 = vld [vmem:[#allocation12 + $0x1b0] ss:$8 sps:$4 sm:$0xff]  }
 0x630   :  { %2223 = vmatprep.subr.bf16.mxu0 %v3165_v37  ;;  %v3204_v37 = vld [vmem:[#allocation12 + $0x1c4] ss:$8 sps:$4 sm:$0xff]  }
 0x633   :  { %2224 = vmatpush1.bf16.msra.mxu0 %v3163_v42  ;;  %v3202_v42 = vld [vmem:[#allocation12 + $0x1c0] ss:$8 sps:$4 sm:$0xff]  }
 0x634   :  { %2234 = vmatprep.subr.bf16.mxu0 %v3168_v57  ;;  %v1614_v57 = vsub.s32 2, %v4026_v49 }
 0x636   :  { %v1615_v1 = vrot.slane %v4029_v7, %v1614_v57  ;;  %v3229_v7 = vld [vmem:[%s4077_s13 + $0x38] sm:$0xff]  }
 0x637   :  { %2740 = vmatpush3.bf16.msra.mxu1 %v3229_v7 }
 0x6c9   :  { %v1741_v21 = vpop.f32.mrb[20].mxu0  ;;  %v4040_v22 = vpop.f32.mrb[32].mxu1 }
 0x6ca   :  { %v1742_v24 = vadd.f32 %v1741_v21, %v1607_v9  ;;  %v1743_v25 = vpop.f32.mrb[21].mxu0  ;;  %v1784_v26 = vpop.f32.mrb[33].mxu1  ;;  %v1783_v40 = vadd.f32 %v4040_v22, %v1615_v1  ;;  %v1866_v9 = vrot.slane %v1861_v3, %v1606_v62 }
 0x6cb   :  { %v1744_v27 = vadd.f32 %v1743_v25, %v1611_v12  ;;  %v1785_v28 = vadd.f32 %v1784_v26, %v1619_v13  ;;  %v1745_v29 = vpop.f32.mrb[22].mxu0  ;;  %v1786_v30 = vpop.f32.mrb[34].mxu1  ;;  %v1870_v12 = vrot.slane %v1861_v3, %v1610_v8 }
 0x6cc   :  { %v1789_v33 = vmax.f32 %v1742_v24, 0.0  ;;  %v1746_v34 = vpop.f32.mrb[23].mxu0  ;;  %v1787_v36 = vpop.f32.mrb[35].mxu1  ;;  %v1791_v45 = vmax.f32 %v1783_v40, 0.0 }
 0x6cd   :  { %v1790_v38 = vmax.f32 %v1744_v27, 0.0  ;;  %v1792_v43 = vmax.f32 %v1785_v28, 0.0  ;;  %v2629_v34 = vld [vmem:[#allocation15] ss:$0 sm:$0xff] }
 0x6ce   :  { %v1793_v56 = vpack.c.bf16 %v1789_v33, %v1789_v33  ;;  %v1795_v5 = vpack.c.bf16 %v1791_v45, %v1791_v45 }
 0x6cf   :  { %v1794_v46 = vpack.c.bf16 %v1790_v38, %v1790_v38  ;;  %v1796_v0 = vpack.c.bf16 %v1792_v43, %v1792_v43 }
 0x6d1   :  { %2225 = vmatprep.mubr.bf16.mxu0 %v1794_v46 }
 0x6d2   :  { %2226 = vmatmul.mubr.bf16.vlgmr.msra.gmra.mrb[24].mxu0 %v1793_v56 }
 0x6d3   :  { %2235 = vmatpush1.bf16.msra.mxu0 %v3166_v60  ;;  %2266 = vmatprep.mubr.bf16.mxu0 %v1796_v0 }
 0x6d4   :  { %2236 = vmatprep.subr.bf16.mxu0 %v3171_v63 }
 0x6d7   :  { %2237 = vmatpush1.bf16.msra.mxu0 %v3169_v59 }
 0x6d8   :  { %2238 = vmatprep.subr.bf16.mxu0 %v3174_v61 }
 0x6db   :  { %2239 = vmatpush1.bf16.msra.mxu0 %v3172_v4 }
 0x6dc   :  { %2240 = vmatprep.subr.bf16.mxu0 %v3177_v11 }
 0x6df   :  { %2241 = vmatpush1.bf16.msra.mxu0 %v3175_v47 }
 0x6e0   :  { %2242 = vmatprep.subr.bf16.mxu0 %v3180_v48 }
 0x6e3   :  { %2243 = vmatpush1.bf16.msra.mxu0 %v3178_v50 }
 0x6e4   :  { %2244 = vmatprep.subr.bf16.mxu0 %v3183_v51 }
 0x6e7   :  { %2245 = vmatpush1.bf16.msra.mxu0 %v3181_v14 }
 0x6e8   :  { %2246 = vmatprep.subr.bf16.mxu0 %v3186_v20 }
 0x6eb   :  { %2247 = vmatpush1.bf16.msra.mxu0 %v3184_v52 }
 0x6ec   :  { %2248 = vmatprep.subr.bf16.mxu0 %v3189_v10 }
 0x6ef   :  { %2249 = vmatpush1.bf16.msra.mxu0 %v3187_v19 }
 0x6f0   :  { %2250 = vmatprep.subr.bf16.mxu0 %v3192_v58 }
 0x6f3   :  { %2251 = vmatpush1.bf16.msra.mxu0 %v3190_v53 }
 0x6f4   :  { %2252 = vmatprep.subr.bf16.mxu0 %v3195_v15 }
 0x6f7   :  { %2253 = vmatpush1.bf16.msra.mxu0 %v3193_v17 }
 0x6f8   :  { %2254 = vmatprep.subr.bf16.mxu0 %v3198_v23 }
 0x6fb   :  { %2255 = vmatpush1.bf16.msra.mxu0 %v3196_v31 }
 0x6fc   :  { %2256 = vmatprep.subr.bf16.mxu0 %v3201_v54 }
 0x6ff   :  { %2257 = vmatpush1.bf16.msra.mxu0 %v3199_v55 }
 0x700   :  { %2258 = vmatprep.subr.bf16.mxu0 %v3204_v37 }
 0x703   :  { %2259 = vmatpush1.bf16.msra.mxu0 %v3202_v42 }
 0x704   :  { %2260 = vmatprep.subr.bf16.mxu0 %v3207_v32 }
 0x707   :  { %2261 = vmatpush1.bf16.msra.mxu0 %v3205_v41 }
 0x708   :  { %2262 = vmatprep.subr.bf16.mxu0 %v3210_v2 }
 0x70b   :  { %2263 = vmatpush1.bf16.msra.mxu0 %v3208_v35 }
 0x70c   :  { %2264 = vmatprep.subr.bf16.mxu0 %v3213_v44 }
 0x70f   :  { %2265 = vmatpush1.bf16.msra.mxu0 %v3211_v39 }
 0x712   :  { %2267 = vmatmul.mubr.bf16.vlgmr.msra.gmra.mrb[24].mxu0 %v1795_v5 }
 0x7e5   :  { %v2268_v13 = vpop.f32.mrb[24].mxu0 }
 0x7e6   :  { %v2927_v21 = vadd.f32 %v2268_v13, %v1866_v9  ;;  %v2270_v22 = vpop.f32.mrb[25].mxu0 }
 0x7e7   :  { %v2928_v24 = vadd.f32 %v2270_v22, %v1870_v12  ;;  %v2272_v25 = vpop.f32.mrb[26].mxu0 }
 0x7e8   :  { %v2275_v26 = vmax.f32 %v2927_v21, 0.0  ;;  %v2273_v27 = vpop.f32.mrb[27].mxu0 }
 0x7e9   :  { %v2276_v28 = vmax.f32 %v2928_v24, 0.0 }
 0x7ea   :  { %v2277_v30 = vpack.c.bf16 %v2275_v26, %v2275_v26 }
 0x7eb   :  { %v2278_v29 = vpack.c.bf16 %v2276_v28, %v2276_v28 }
 0x7ed   :  { %2446 = vmatprep.mubr.bf16.mxu1 %v2278_v29 }
 0x7ee   :  { %2447 = vmatmul.mubr.bf16.vlgmr.msra.gmra.mrb[36].mxu1 %v2277_v30 }
 0x8c1   :  { %v2741_v33 = vpop.f32.mrb[36].mxu1 }
 0x8c2   :  { %v2742_v36 = vpop.f32.mrb[37].mxu1 }
 0x8c3   :  { %v2743_v38 = vadd.f32 %v2742_v36, %v2741_v33  ;;  %v2744_v62 = vpop.f32.mrb[38].mxu1 }
 0x8c4   :  { %v2745_v43 = vpop.f32.mrb[39].mxu1 }
 0x8c5   :  { %v2449_v49 = vadd.f32 %v2743_v38, %v2629_v34 }
 0x8c7   :  { %2454 = vst [vmem:[%s4079_s15] sm:$0xff] %v2449_v49 }
 0x8c8   :  { %2459 = vsyncpa [#allocation3], 1 }
 0x8c9   :  { %2460 = vsyncpa [#allocation5], 1 }
 0x8ca   :  { %2461 = vsyncpa [#allocation8], 1 }
 0x8cb   :  { %2462 = vsyncpa [#allocation11], 1 }
 0x8cc   :  { %2463 = vsyncpa [#allocation14], 1 }

</bundles_post_ra>
